<compile_context>
chip_gen: v5e
topology: v5e:2x2
jax: 0.10.0
libtpu: 0.0.40
codegen_flags: <defaults>
</compile_context>

<pallas_src>
import numpy as np
import jax
import jax.numpy as jnp
from jax import lax
from jax.experimental import pallas as pl
from jax.experimental.pallas import tpu as pltpu


# ----------------------------------------------------------------------------
# Offline parameter construction / exact weight fusion (numpy float64)
# ----------------------------------------------------------------------------
# (shift s, parity p) -> ConvTranspose tap index k = kh*3 + kw
#   shifts:   0 = x[i,j], 1 = x[i+1,j], 2 = x[i,j+1], 3 = x[i+1,j+1]
#   parities: p = 2*pr + pc  (output pixel (2i+pr, 2j+pc))
_TAP_MAP = {(0, 0): 4,
            (0, 1): 5, (2, 1): 3,
            (0, 2): 7, (1, 2): 1,
            (0, 3): 8, (1, 3): 2, (2, 3): 6, (3, 3): 0}


def init_block_params(key, in_channels, n_classes):
    """Random torch-layout weights + offline-fused kernel weights for one block."""
    C, Cs = n_classes, in_channels
    k1, k2, k3, k4 = jax.random.split(key, 4)
    wt = jax.random.normal(k1, (C, C, 3, 3), jnp.float32) / np.sqrt(C * 9)        # ConvT (Cin,Cout,3,3)
    bt = jax.random.normal(k2, (C,), jnp.float32) * 0.01
    wc = jax.random.normal(k3, (C, C + Cs, 1, 1), jnp.float32) / np.sqrt(C + Cs)  # Conv1x1 (Cout,Cin,1,1)
    bc = jax.random.normal(k4, (C,), jnp.float32) * 0.01

    taps = np.transpose(np.asarray(wt, np.float64), (2, 3, 0, 1)).reshape(9, C, C)  # [k, ci, co]
    wcu = np.asarray(wc, np.float64)[:, :C, 0, 0].T       # (C,  C)  "up" part of the 1x1
    wcs = np.asarray(wc, np.float64)[:, C:, 0, 0].T       # (Cs, C)  "skip" part
    bt64 = np.asarray(bt, np.float64)
    bc64 = np.asarray(bc, np.float64)

    # ConvTranspose taps as a (shift, ci) x (parity, c_mid) block matrix; fold in the 1x1 "up" part.
    wup = np.zeros((4 * C, 4 * C), np.float64)
    for (s, p), k in _TAP_MAP.items():
        wup[s * C:(s + 1) * C, p * C:(p + 1) * C] = taps[k]
    wfold = np.concatenate([wup[:, p * C:(p + 1) * C] @ wcu for p in range(4)], axis=1)  # (4C, 4C)
    bias = bt64 @ wcu + bc64                                                             # (C,)

    return dict(
        wt_torch=wt, bt_torch=bt, wc_torch=wc, bc_torch=bc,
        wupT=jnp.asarray(np.ascontiguousarray(wfold.T).astype(np.float32)),   # (4C,4C) rows=(p,co), cols=(s,ci)
        wcsT=jnp.asarray(np.ascontiguousarray(wcs.T).astype(np.float32)),     # (C, Cs)
        biasT=jnp.asarray(bias.astype(np.float32)[:, None]),                  # (C, 1)
    )


def _make_interleave_T(H, W):
    """Pixel-shuffle permutation: R[p*M + m, (2i+pr)*2W + 2j+pc] = 1, m=i*W+j, p=2pr+pc."""
    M = H * W
    R = np.zeros((4 * M, 4 * M), np.float32)
    for i in range(H):
        for j in range(W):
            m = i * W + j
            for pr in range(2):
                for pc in range(2):
                    p = 2 * pr + pc
                    fine = (2 * i + pr) * (2 * W) + (2 * j + pc)
                    R[p * M + m, fine] = 1.0
    return R


def _interp_matrix(out_size, in_size):
    """PyTorch bilinear, align_corners=False, as a (out, in) weight matrix (numpy)."""
    dst = np.arange(out_size, dtype=np.float64)
    scale = in_size / out_size
    src = np.maximum(scale * (dst + 0.5) - 0.5, 0.0)
    i0 = np.minimum(np.floor(src).astype(np.int64), in_size - 1)
    i1 = np.minimum(i0 + 1, in_size - 1)
    l1 = src - i0
    l0 = 1.0 - l1
    m = np.zeros((out_size, in_size), dtype=np.float64)
    m[np.arange(out_size), i0] += l0
    m[np.arange(out_size), i1] += l1
    return m.astype(np.float32)


def build_constants(n_classes, H0, W0, input_shape):
    C = n_classes
    consts = {}
    h, w = H0, W0
    for key in ('x2', 'x4', 'x8'):
        consts[key] = jnp.asarray(_make_interleave_T(h, w))
        h, w = 2 * h, 2 * w
    Hi, Wi = h, w                                        # final feature resolution (8*H0, 8*W0)
    Rh = _interp_matrix(input_shape[0], Hi)              # (Ho, Hi)
    Rw = _interp_matrix(input_shape[1], Wi)              # (Wo, Wi)
    consts['rwT'] = jnp.asarray(np.ascontiguousarray(Rw.T))                     # (Wi, Wo)
    consts['rhBD'] = jnp.asarray(np.kron(np.eye(C, dtype=np.float32), Rh))      # (C*Ho, C*Hi)
    return consts


# ----------------------------------------------------------------------------
# Pallas kernel (single fused forward)
# ----------------------------------------------------------------------------
def _shift_taps(xT, W):
    """xT: (C, H*W) channel-major map (lanes = i*W + j, row-major).
    Returns (4C, H*W): [x(i,j); x(i+1,j); x(i,j+1); x(i+1,j+1)], zero outside image."""
    C, M = xT.shape
    f32 = jnp.float32
    down = jnp.concatenate([xT[:, W:], jnp.zeros((C, W), f32)], axis=1)
    right = jnp.concatenate([xT[:, 1:], jnp.zeros((C, 1), f32)], axis=1)
    diag = jnp.concatenate([xT[:, W + 1:], jnp.zeros((C, W + 1), f32)], axis=1)
    lane = lax.broadcasted_iota(jnp.int32, (C, M), 1)
    edge = (lane % W) == (W - 1)            # j == W-1: (j+1) taps fall outside the image
    right = jnp.where(edge, 0.0, right)
    diag = jnp.where(edge, 0.0, diag)
    return jnp.concatenate([xT, down, right, diag], axis=0)


def _upsample_block(xT, W, skipT, wupT, wcsT, biasT, rT):
    """One FCNUpsampleBlock, channel-major.  xT: (C, H*W) -> (C, 4*H*W)."""
    C = xT.shape[0]
    taps = _shift_taps(xT, W)                                              # (4C, M)
    packedT = jnp.dot(wupT, taps, preferred_element_type=jnp.float32)      # (4C, M) rows=(parity, c)
    stackedT = jnp.concatenate(
        [packedT[p * C:(p + 1) * C, :] for p in range(4)], axis=1)         # (C, 4M) lanes=(parity, cell)
    upT = jnp.dot(stackedT, rT, preferred_element_type=jnp.float32)        # (C, 4M) pixel-shuffled
    skT = jnp.dot(wcsT, skipT, preferred_element_type=jnp.float32)         # (C, 4M)
    return upT + skT + biasT


def _make_kernel(C, H0, W0):
    Hi, Wi = 8 * H0, 8 * W0

    def kernel(x0_ref, s1_ref, s2_ref, s3_ref,
               wu1, wc1, b1, r1,
               wu2, wc2, b2, r2,
               wu3, wc3, b3, r3,
               rwT, rhBD,
               o_ref, planar):
        x = x0_ref[0]                                                      # (C, H0*W0)
        x = _upsample_block(x, W0, s1_ref[0], wu1[...], wc1[...], b1[...], r1[...])
        x = _upsample_block(x, 2 * W0, s2_ref[0], wu2[...], wc2[...], b2[...], r2[...])
        x = _upsample_block(x, 4 * W0, s3_ref[0], wu3[...], wc3[...], b3[...], r3[...])
        # x: (C, Hi*Wi), lanes row-major over the final feature map.

        # Lane -> sublane "transpose" of the spatial rows via a VMEM scratch.
        for a in range(Hi):
            planar[:, a, :] = x[:, a * Wi:(a + 1) * Wi]                    # (C, Wi)
        v2d = jnp.concatenate([planar[c] for c in range(C)], axis=0)       # (C*Hi, Wi)

        # Separable bilinear resize: columns then rows (rows via kron(I_C, Rh)).
        t = jnp.dot(v2d, rwT[...], preferred_element_type=jnp.float32)     # (C*Hi, Wo)
        o_ref[0] = jnp.dot(rhBD[...], t, preferred_element_type=jnp.float32)  # (C*Ho, Wo)

    return kernel


def fcn_forward(classifier_output, backbone_layers, input_shape, params, consts):
    """FCNSegmentation.forward (type_=4).  NCHW in, NCHW out.  One pallas_call."""
    N, C, H0, W0 = classifier_output.shape
    Ho, Wo = input_shape
    Hi, Wi = 8 * H0, 8 * W0

    # Metadata-only relayouts: channel-major with flattened spatial on the lane axis.
    x0 = classifier_output.reshape(N, C, H0 * W0)
    s1 = backbone_layers['layer3']
    s2 = backbone_layers['layer2']
    s3 = backbone_layers['layer1']
    s1 = s1.reshape(N, s1.shape[1], -1)
    s2 = s2.reshape(N, s2.shape[1], -1)
    s3 = s3.reshape(N, s3.shape[1], -1)

    p2, p4, p8 = params['x2'], params['x4'], params['x8']
    args = (x0, s1, s2, s3,
            p2['wupT'], p2['wcsT'], p2['biasT'], consts['x2'],
            p4['wupT'], p4['wcsT'], p4['biasT'], consts['x4'],
            p8['wupT'], p8['wcsT'], p8['biasT'], consts['x8'],
            consts['rwT'], consts['rhBD'])

    def batched_spec(a):
        return pl.BlockSpec((1,) + a.shape[1:], lambda n: (n, 0, 0))

    def shared_spec(a):
        return pl.BlockSpec(a.shape, lambda n: (0, 0))

    in_specs = [batched_spec(a) for a in args[:4]] + [shared_spec(a) for a in args[4:]]

    out = pl.pallas_call(
        _make_kernel(C, H0, W0),
        grid=(N,),
        in_specs=in_specs,
        out_specs=pl.BlockSpec((1, C * Ho, Wo), lambda n: (n, 0, 0)),
        out_shape=jax.ShapeDtypeStruct((N, C * Ho, Wo), jnp.float32),
        scratch_shapes=[pltpu.VMEM((C, Hi, Wi), jnp.float32)],
        compiler_params=pltpu.CompilerParams(dimension_semantics=("parallel",)),
    )(*args)
    return out.reshape(N, C, Ho, Wo)


# ----------------------------------------------------------------------------
# Pure-JAX reference (NCHW, lax conv, HIGHEST precision) for correctness check
# ----------------------------------------------------------------------------
def ref_block(x, skip, p):
    wt, bt, wc, bc = p['wt_torch'], p['bt_torch'], p['wc_torch'], p['bc_torch']
    rhs = jnp.flip(jnp.transpose(wt, (1, 0, 2, 3)), axis=(2, 3))   # (Cout, Cin, 3, 3)
    up = lax.conv_general_dilated(
        x, rhs, window_strides=(1, 1), padding=((1, 2), (1, 2)),
        lhs_dilation=(2, 2), dimension_numbers=('NCHW', 'OIHW', 'NCHW'),
        precision=lax.Precision.HIGHEST)
    up = up + bt[None, :, None, None]
    cat = jnp.concatenate([up, skip], axis=1)
    return (jnp.einsum('nihw,oi->nohw', cat, wc[:, :, 0, 0],
                       precision=lax.Precision.HIGHEST)
            + bc[None, :, None, None])


def ref_forward(cls_out, layers, input_shape, params):
    x = ref_block(cls_out, layers['layer3'], params['x2'])
    x = ref_block(x, layers['layer2'], params['x4'])
    x = ref_block(x, layers['layer1'], params['x8'])
    Rh = jnp.asarray(_interp_matrix(input_shape[0], x.shape[2]))
    Rw = jnp.asarray(_interp_matrix(input_shape[1], x.shape[3]))
    return jnp.einsum('nchw,ph,qw->ncpq', x, Rh, Rw,
                      precision=lax.Precision.HIGHEST)


# ----------------------------------------------------------------------------
if __name__ == "__main__":
    key = jax.random.PRNGKey(0)
    ks = jax.random.split(key, 8)

    n_classes = 8
    N = 2
    input_shape = (64, 64)   # original image H, W

    # classifier output at 1/32 resolution; resnet18 skip features
    cls_out = jax.random.normal(ks[0], (N, n_classes, 2, 2), jnp.float32)
    layers = {
        'layer3': jax.random.normal(ks[1], (N, 256, 4, 4), jnp.float32),
        'layer2': jax.random.normal(ks[2], (N, 128, 8, 8), jnp.float32),
        'layer1': jax.random.normal(ks[3], (N, 64, 16, 16), jnp.float32),
    }
    params = {
        'x2': init_block_params(ks[4], 256, n_classes),
        'x4': init_block_params(ks[5], 128, n_classes),
        'x8': init_block_params(ks[6], 64, n_classes),
    }
    consts = build_constants(n_classes, 2, 2, input_shape)

    fwd = jax.jit(lambda c, l: fcn_forward(c, l, input_shape, params, consts))
    out = jax.block_until_ready(fwd(cls_out, layers))

    ref = ref_forward(cls_out, layers, input_shape, params)
    assert out.shape == (N, n_classes, input_shape[0], input_shape[1])
    np.testing.assert_allclose(np.asarray(out), np.asarray(ref), rtol=1e-3, atol=1e-3)
    print("KERNEL_OK")
</pallas_src>

<mosaic_0001>
module attributes {stable_mosaic.version = 11 : i64} {
  func.func @kernel(%arg0: i32, %arg1: memref<1x8x4xf32, #tpu.memory_space<vmem>>, %arg2: memref<1x256x16xf32, #tpu.memory_space<vmem>>, %arg3: memref<1x128x64xf32, #tpu.memory_space<vmem>>, %arg4: memref<1x64x256xf32, #tpu.memory_space<vmem>>, %arg5: memref<32x32xf32, #tpu.memory_space<vmem>>, %arg6: memref<8x256xf32, #tpu.memory_space<vmem>>, %arg7: memref<8x1xf32, #tpu.memory_space<vmem>>, %arg8: memref<16x16xf32, #tpu.memory_space<vmem>>, %arg9: memref<32x32xf32, #tpu.memory_space<vmem>>, %arg10: memref<8x128xf32, #tpu.memory_space<vmem>>, %arg11: memref<8x1xf32, #tpu.memory_space<vmem>>, %arg12: memref<64x64xf32, #tpu.memory_space<vmem>>, %arg13: memref<32x32xf32, #tpu.memory_space<vmem>>, %arg14: memref<8x64xf32, #tpu.memory_space<vmem>>, %arg15: memref<8x1xf32, #tpu.memory_space<vmem>>, %arg16: memref<256x256xf32, #tpu.memory_space<vmem>>, %arg17: memref<16x64xf32, #tpu.memory_space<vmem>>, %arg18: memref<512x128xf32, #tpu.memory_space<vmem>>, %arg19: memref<1x512x64xf32, #tpu.memory_space<vmem>>, %arg20: memref<8x16x16xf32, #tpu.memory_space<vmem>>) attributes {dimension_semantics = [#tpu.dimension_semantics<parallel>], iteration_bounds = array<i64: 2>, scalar_prefetch = 0 : i64, scratch_operands = 1 : i64, tpu.core_type = #tpu.core_type<tc>, window_params = [{transform_indices = @transform_0, window_bounds = array<i64: 1, 8, 4>}, {transform_indices = @transform_1, window_bounds = array<i64: 1, 256, 16>}, {transform_indices = @transform_2, window_bounds = array<i64: 1, 128, 64>}, {transform_indices = @transform_3, window_bounds = array<i64: 1, 64, 256>}, {pipeline_mode = #tpu.pipeline_mode<synchronous>, transform_indices = @transform_4, window_bounds = array<i64: 32, 32>}, {pipeline_mode = #tpu.pipeline_mode<synchronous>, transform_indices = @transform_5, window_bounds = array<i64: 8, 256>}, {pipeline_mode = #tpu.pipeline_mode<synchronous>, transform_indices = @transform_6, window_bounds = array<i64: 8, 1>}, {pipeline_mode = #tpu.pipeline_mode<synchronous>, transform_indices = @transform_7, window_bounds = array<i64: 16, 16>}, {pipeline_mode = #tpu.pipeline_mode<synchronous>, transform_indices = @transform_8, window_bounds = array<i64: 32, 32>}, {pipeline_mode = #tpu.pipeline_mode<synchronous>, transform_indices = @transform_9, window_bounds = array<i64: 8, 128>}, {pipeline_mode = #tpu.pipeline_mode<synchronous>, transform_indices = @transform_10, window_bounds = array<i64: 8, 1>}, {pipeline_mode = #tpu.pipeline_mode<synchronous>, transform_indices = @transform_11, window_bounds = array<i64: 64, 64>}, {pipeline_mode = #tpu.pipeline_mode<synchronous>, transform_indices = @transform_12, window_bounds = array<i64: 32, 32>}, {pipeline_mode = #tpu.pipeline_mode<synchronous>, transform_indices = @transform_13, window_bounds = array<i64: 8, 64>}, {pipeline_mode = #tpu.pipeline_mode<synchronous>, transform_indices = @transform_14, window_bounds = array<i64: 8, 1>}, {pipeline_mode = #tpu.pipeline_mode<synchronous>, transform_indices = @transform_15, window_bounds = array<i64: 256, 256>}, {pipeline_mode = #tpu.pipeline_mode<synchronous>, transform_indices = @transform_16, window_bounds = array<i64: 16, 64>}, {pipeline_mode = #tpu.pipeline_mode<synchronous>, transform_indices = @transform_17, window_bounds = array<i64: 512, 128>}, {transform_indices = @transform_18, window_bounds = array<i64: 1, 512, 64>}]} {
    %c0 = arith.constant 0 : index
    %c0_0 = arith.constant 0 : index
    %c0_1 = arith.constant 0 : index
    %0 = vector.load %arg1[%c0, %c0_0, %c0_1] : memref<1x8x4xf32, #tpu.memory_space<vmem>>, vector<1x8x4xf32>
    %1 = vector.shape_cast %0 : vector<1x8x4xf32> to vector<8x4xf32>
    %c0_2 = arith.constant 0 : index
    %c0_3 = arith.constant 0 : index
    %c0_4 = arith.constant 0 : index
    %2 = vector.load %arg2[%c0_2, %c0_3, %c0_4] : memref<1x256x16xf32, #tpu.memory_space<vmem>>, vector<1x256x16xf32>
    %3 = vector.shape_cast %2 : vector<1x256x16xf32> to vector<256x16xf32>
    %c0_5 = arith.constant 0 : index
    %c0_6 = arith.constant 0 : index
    %4 = vector.load %arg5[%c0_5, %c0_6] : memref<32x32xf32, #tpu.memory_space<vmem>>, vector<32x32xf32>
    %c0_7 = arith.constant 0 : index
    %c0_8 = arith.constant 0 : index
    %5 = vector.load %arg6[%c0_7, %c0_8] : memref<8x256xf32, #tpu.memory_space<vmem>>, vector<8x256xf32>
    %c0_9 = arith.constant 0 : index
    %c0_10 = arith.constant 0 : index
    %6 = vector.load %arg7[%c0_9, %c0_10] : memref<8x1xf32, #tpu.memory_space<vmem>>, vector<8x1xf32>
    %c0_11 = arith.constant 0 : index
    %c0_12 = arith.constant 0 : index
    %7 = vector.load %arg8[%c0_11, %c0_12] : memref<16x16xf32, #tpu.memory_space<vmem>>, vector<16x16xf32>
    %8 = vector.extract_strided_slice %1 {offsets = [0, 2], sizes = [8, 2], strides = [1, 1]} : vector<8x4xf32> to vector<8x2xf32>
    %cst = arith.constant 0.000000e+00 : f32
    %9 = vector.broadcast %cst : f32 to vector<8x2xf32>
    %10 = tpu.concatenate %8, %9 in 1 : vector<8x2xf32>, vector<8x2xf32> -> vector<8x4xf32>
    %11 = vector.extract_strided_slice %1 {offsets = [0, 1], sizes = [8, 3], strides = [1, 1]} : vector<8x4xf32> to vector<8x3xf32>
    %cst_13 = arith.constant 0.000000e+00 : f32
    %12 = vector.broadcast %cst_13 : f32 to vector<8x1xf32>
    %13 = tpu.concatenate %11, %12 in 1 : vector<8x3xf32>, vector<8x1xf32> -> vector<8x4xf32>
    %14 = vector.extract_strided_slice %1 {offsets = [0, 3], sizes = [8, 1], strides = [1, 1]} : vector<8x4xf32> to vector<8x1xf32>
    %cst_14 = arith.constant 0.000000e+00 : f32
    %15 = vector.broadcast %cst_14 : f32 to vector<8x3xf32>
    %16 = tpu.concatenate %14, %15 in 1 : vector<8x1xf32>, vector<8x3xf32> -> vector<8x4xf32>
    %17 = tpu.iota {dimensions = array<i32: 1>} : vector<8x4xi32>
    %c2_i32 = arith.constant 2 : i32
    %c0_i32 = arith.constant 0 : i32
    %18 = arith.cmpi eq, %c2_i32, %c0_i32 : i32
    %c1_i32 = arith.constant 1 : i32
    %19 = arith.select %18, %c1_i32, %c2_i32 : i32
    %20 = vector.broadcast %19 : i32 to vector<8x4xi32>
    %21 = arith.remsi %17, %20 : vector<8x4xi32>
    %c0_i32_15 = arith.constant 0 : i32
    %22 = vector.broadcast %c0_i32_15 : i32 to vector<8x4xi32>
    %23 = arith.cmpi ne, %21, %22 : vector<8x4xi32>
    %c0_i32_16 = arith.constant 0 : i32
    %24 = vector.broadcast %c0_i32_16 : i32 to vector<8x4xi32>
    %25 = arith.cmpi slt, %21, %24 : vector<8x4xi32>
    %c0_i32_17 = arith.constant 0 : i32
    %26 = arith.cmpi slt, %19, %c0_i32_17 : i32
    %27 = vector.broadcast %26 : i1 to vector<8x4xi1>
    %28 = vector.broadcast %27 : vector<8x4xi1> to vector<8x4xi1>
    %29 = arith.xori %25, %28 : vector<8x4xi1>
    %30 = arith.andi %29, %23 : vector<8x4xi1>
    %31 = vector.broadcast %19 : i32 to vector<8x4xi32>
    %32 = arith.addi %21, %31 : vector<8x4xi32>
    %33 = arith.select %30, %32, %21 : vector<8x4xi1>, vector<8x4xi32>
    %c1_i32_18 = arith.constant 1 : i32
    %34 = vector.broadcast %c1_i32_18 : i32 to vector<8x4xi32>
    %35 = arith.cmpi eq, %33, %34 : vector<8x4xi32>
    %cst_19 = arith.constant 0.000000e+00 : f32
    %36 = vector.broadcast %cst_19 : f32 to vector<8x4xf32>
    %37 = arith.select %35, %36, %13 : vector<8x4xi1>, vector<8x4xf32>
    %cst_20 = arith.constant 0.000000e+00 : f32
    %38 = vector.broadcast %cst_20 : f32 to vector<8x4xf32>
    %39 = arith.select %35, %38, %16 : vector<8x4xi1>, vector<8x4xf32>
    %40 = tpu.concatenate %1, %10, %37, %39 in 0 : vector<8x4xf32>, vector<8x4xf32>, vector<8x4xf32>, vector<8x4xf32> -> vector<32x4xf32>
    %cst_21 = arith.constant dense<0.000000e+00> : vector<32x4xf32>
    %41 = tpu.matmul %4, %40, %cst_21 {dimension_numbers = #tpu.dot_dimension_numbers<[1], [0], [0], [1], [0, 0, 1, 1], [], []>} : vector<32x32xf32>, vector<32x4xf32>, vector<32x4xf32> -> vector<32x4xf32>
    %42 = vector.extract_strided_slice %41 {offsets = [0, 0], sizes = [8, 4], strides = [1, 1]} : vector<32x4xf32> to vector<8x4xf32>
    %43 = vector.extract_strided_slice %41 {offsets = [8, 0], sizes = [8, 4], strides = [1, 1]} : vector<32x4xf32> to vector<8x4xf32>
    %44 = vector.extract_strided_slice %41 {offsets = [16, 0], sizes = [8, 4], strides = [1, 1]} : vector<32x4xf32> to vector<8x4xf32>
    %45 = vector.extract_strided_slice %41 {offsets = [24, 0], sizes = [8, 4], strides = [1, 1]} : vector<32x4xf32> to vector<8x4xf32>
    %46 = tpu.concatenate %42, %43, %44, %45 in 1 : vector<8x4xf32>, vector<8x4xf32>, vector<8x4xf32>, vector<8x4xf32> -> vector<8x16xf32>
    %cst_22 = arith.constant dense<0.000000e+00> : vector<8x16xf32>
    %47 = tpu.matmul %46, %7, %cst_22 {dimension_numbers = #tpu.dot_dimension_numbers<[1], [0], [0], [1], [0, 0, 1, 1], [], []>} : vector<8x16xf32>, vector<16x16xf32>, vector<8x16xf32> -> vector<8x16xf32>
    %cst_23 = arith.constant dense<0.000000e+00> : vector<8x16xf32>
    %48 = tpu.matmul %5, %3, %cst_23 {dimension_numbers = #tpu.dot_dimension_numbers<[1], [0], [0], [1], [0, 0, 1, 1], [], []>} : vector<8x256xf32>, vector<256x16xf32>, vector<8x16xf32> -> vector<8x16xf32>
    %49 = arith.addf %47, %48 : vector<8x16xf32>
    %50 = vector.broadcast %6 : vector<8x1xf32> to vector<8x16xf32>
    %51 = arith.addf %49, %50 : vector<8x16xf32>
    %c0_24 = arith.constant 0 : index
    %c0_25 = arith.constant 0 : index
    %c0_26 = arith.constant 0 : index
    %52 = vector.load %arg3[%c0_24, %c0_25, %c0_26] : memref<1x128x64xf32, #tpu.memory_space<vmem>>, vector<1x128x64xf32>
    %53 = vector.shape_cast %52 : vector<1x128x64xf32> to vector<128x64xf32>
    %c0_27 = arith.constant 0 : index
    %c0_28 = arith.constant 0 : index
    %54 = vector.load %arg9[%c0_27, %c0_28] : memref<32x32xf32, #tpu.memory_space<vmem>>, vector<32x32xf32>
    %c0_29 = arith.constant 0 : index
    %c0_30 = arith.constant 0 : index
    %55 = vector.load %arg10[%c0_29, %c0_30] : memref<8x128xf32, #tpu.memory_space<vmem>>, vector<8x128xf32>
    %c0_31 = arith.constant 0 : index
    %c0_32 = arith.constant 0 : index
    %56 = vector.load %arg11[%c0_31, %c0_32] : memref<8x1xf32, #tpu.memory_space<vmem>>, vector<8x1xf32>
    %c0_33 = arith.constant 0 : index
    %c0_34 = arith.constant 0 : index
    %57 = vector.load %arg12[%c0_33, %c0_34] : memref<64x64xf32, #tpu.memory_space<vmem>>, vector<64x64xf32>
    %58 = vector.extract_strided_slice %51 {offsets = [0, 4], sizes = [8, 12], strides = [1, 1]} : vector<8x16xf32> to vector<8x12xf32>
    %cst_35 = arith.constant 0.000000e+00 : f32
    %59 = vector.broadcast %cst_35 : f32 to vector<8x4xf32>
    %60 = tpu.concatenate %58, %59 in 1 : vector<8x12xf32>, vector<8x4xf32> -> vector<8x16xf32>
    %61 = vector.extract_strided_slice %51 {offsets = [0, 1], sizes = [8, 15], strides = [1, 1]} : vector<8x16xf32> to vector<8x15xf32>
    %cst_36 = arith.constant 0.000000e+00 : f32
    %62 = vector.broadcast %cst_36 : f32 to vector<8x1xf32>
    %63 = tpu.concatenate %61, %62 in 1 : vector<8x15xf32>, vector<8x1xf32> -> vector<8x16xf32>
    %64 = vector.extract_strided_slice %51 {offsets = [0, 5], sizes = [8, 11], strides = [1, 1]} : vector<8x16xf32> to vector<8x11xf32>
    %cst_37 = arith.constant 0.000000e+00 : f32
    %65 = vector.broadcast %cst_37 : f32 to vector<8x5xf32>
    %66 = tpu.concatenate %64, %65 in 1 : vector<8x11xf32>, vector<8x5xf32> -> vector<8x16xf32>
    %67 = tpu.iota {dimensions = array<i32: 1>} : vector<8x16xi32>
    %c4_i32 = arith.constant 4 : i32
    %c0_i32_38 = arith.constant 0 : i32
    %68 = arith.cmpi eq, %c4_i32, %c0_i32_38 : i32
    %c1_i32_39 = arith.constant 1 : i32
    %69 = arith.select %68, %c1_i32_39, %c4_i32 : i32
    %70 = vector.broadcast %69 : i32 to vector<8x16xi32>
    %71 = arith.remsi %67, %70 : vector<8x16xi32>
    %c0_i32_40 = arith.constant 0 : i32
    %72 = vector.broadcast %c0_i32_40 : i32 to vector<8x16xi32>
    %73 = arith.cmpi ne, %71, %72 : vector<8x16xi32>
    %c0_i32_41 = arith.constant 0 : i32
    %74 = vector.broadcast %c0_i32_41 : i32 to vector<8x16xi32>
    %75 = arith.cmpi slt, %71, %74 : vector<8x16xi32>
    %c0_i32_42 = arith.constant 0 : i32
    %76 = arith.cmpi slt, %69, %c0_i32_42 : i32
    %77 = vector.broadcast %76 : i1 to vector<8x16xi1>
    %78 = vector.broadcast %77 : vector<8x16xi1> to vector<8x16xi1>
    %79 = arith.xori %75, %78 : vector<8x16xi1>
    %80 = arith.andi %79, %73 : vector<8x16xi1>
    %81 = vector.broadcast %69 : i32 to vector<8x16xi32>
    %82 = arith.addi %71, %81 : vector<8x16xi32>
    %83 = arith.select %80, %82, %71 : vector<8x16xi1>, vector<8x16xi32>
    %c3_i32 = arith.constant 3 : i32
    %84 = vector.broadcast %c3_i32 : i32 to vector<8x16xi32>
    %85 = arith.cmpi eq, %83, %84 : vector<8x16xi32>
    %cst_43 = arith.constant 0.000000e+00 : f32
    %86 = vector.broadcast %cst_43 : f32 to vector<8x16xf32>
    %87 = arith.select %85, %86, %63 : vector<8x16xi1>, vector<8x16xf32>
    %cst_44 = arith.constant 0.000000e+00 : f32
    %88 = vector.broadcast %cst_44 : f32 to vector<8x16xf32>
    %89 = arith.select %85, %88, %66 : vector<8x16xi1>, vector<8x16xf32>
    %90 = tpu.concatenate %51, %60, %87, %89 in 0 : vector<8x16xf32>, vector<8x16xf32>, vector<8x16xf32>, vector<8x16xf32> -> vector<32x16xf32>
    %cst_45 = arith.constant dense<0.000000e+00> : vector<32x16xf32>
    %91 = tpu.matmul %54, %90, %cst_45 {dimension_numbers = #tpu.dot_dimension_numbers<[1], [0], [0], [1], [0, 0, 1, 1], [], []>} : vector<32x32xf32>, vector<32x16xf32>, vector<32x16xf32> -> vector<32x16xf32>
    %92 = vector.extract_strided_slice %91 {offsets = [0, 0], sizes = [8, 16], strides = [1, 1]} : vector<32x16xf32> to vector<8x16xf32>
    %93 = vector.extract_strided_slice %91 {offsets = [8, 0], sizes = [8, 16], strides = [1, 1]} : vector<32x16xf32> to vector<8x16xf32>
    %94 = vector.extract_strided_slice %91 {offsets = [16, 0], sizes = [8, 16], strides = [1, 1]} : vector<32x16xf32> to vector<8x16xf32>
    %95 = vector.extract_strided_slice %91 {offsets = [24, 0], sizes = [8, 16], strides = [1, 1]} : vector<32x16xf32> to vector<8x16xf32>
    %96 = tpu.concatenate %92, %93, %94, %95 in 1 : vector<8x16xf32>, vector<8x16xf32>, vector<8x16xf32>, vector<8x16xf32> -> vector<8x64xf32>
    %cst_46 = arith.constant dense<0.000000e+00> : vector<8x64xf32>
    %97 = tpu.matmul %96, %57, %cst_46 {dimension_numbers = #tpu.dot_dimension_numbers<[1], [0], [0], [1], [0, 0, 1, 1], [], []>} : vector<8x64xf32>, vector<64x64xf32>, vector<8x64xf32> -> vector<8x64xf32>
    %cst_47 = arith.constant dense<0.000000e+00> : vector<8x64xf32>
    %98 = tpu.matmul %55, %53, %cst_47 {dimension_numbers = #tpu.dot_dimension_numbers<[1], [0], [0], [1], [0, 0, 1, 1], [], []>} : vector<8x128xf32>, vector<128x64xf32>, vector<8x64xf32> -> vector<8x64xf32>
    %99 = arith.addf %97, %98 : vector<8x64xf32>
    %100 = vector.broadcast %56 : vector<8x1xf32> to vector<8x64xf32>
    %101 = arith.addf %99, %100 : vector<8x64xf32>
    %c0_48 = arith.constant 0 : index
    %c0_49 = arith.constant 0 : index
    %c0_50 = arith.constant 0 : index
    %102 = vector.load %arg4[%c0_48, %c0_49, %c0_50] : memref<1x64x256xf32, #tpu.memory_space<vmem>>, vector<1x64x256xf32>
    %103 = vector.shape_cast %102 : vector<1x64x256xf32> to vector<64x256xf32>
    %c0_51 = arith.constant 0 : index
    %c0_52 = arith.constant 0 : index
    %104 = vector.load %arg13[%c0_51, %c0_52] : memref<32x32xf32, #tpu.memory_space<vmem>>, vector<32x32xf32>
    %c0_53 = arith.constant 0 : index
    %c0_54 = arith.constant 0 : index
    %105 = vector.load %arg14[%c0_53, %c0_54] : memref<8x64xf32, #tpu.memory_space<vmem>>, vector<8x64xf32>
    %c0_55 = arith.constant 0 : index
    %c0_56 = arith.constant 0 : index
    %106 = vector.load %arg15[%c0_55, %c0_56] : memref<8x1xf32, #tpu.memory_space<vmem>>, vector<8x1xf32>
    %c0_57 = arith.constant 0 : index
    %c0_58 = arith.constant 0 : index
    %107 = vector.load %arg16[%c0_57, %c0_58] : memref<256x256xf32, #tpu.memory_space<vmem>>, vector<256x256xf32>
    %108 = vector.extract_strided_slice %101 {offsets = [0, 8], sizes = [8, 56], strides = [1, 1]} : vector<8x64xf32> to vector<8x56xf32>
    %cst_59 = arith.constant 0.000000e+00 : f32
    %109 = vector.broadcast %cst_59 : f32 to vector<8x8xf32>
    %110 = tpu.concatenate %108, %109 in 1 : vector<8x56xf32>, vector<8x8xf32> -> vector<8x64xf32>
    %111 = vector.extract_strided_slice %101 {offsets = [0, 1], sizes = [8, 63], strides = [1, 1]} : vector<8x64xf32> to vector<8x63xf32>
    %cst_60 = arith.constant 0.000000e+00 : f32
    %112 = vector.broadcast %cst_60 : f32 to vector<8x1xf32>
    %113 = tpu.concatenate %111, %112 in 1 : vector<8x63xf32>, vector<8x1xf32> -> vector<8x64xf32>
    %114 = vector.extract_strided_slice %101 {offsets = [0, 9], sizes = [8, 55], strides = [1, 1]} : vector<8x64xf32> to vector<8x55xf32>
    %cst_61 = arith.constant 0.000000e+00 : f32
    %115 = vector.broadcast %cst_61 : f32 to vector<8x9xf32>
    %116 = tpu.concatenate %114, %115 in 1 : vector<8x55xf32>, vector<8x9xf32> -> vector<8x64xf32>
    %117 = tpu.iota {dimensions = array<i32: 1>} : vector<8x64xi32>
    %c8_i32 = arith.constant 8 : i32
    %c0_i32_62 = arith.constant 0 : i32
    %118 = arith.cmpi eq, %c8_i32, %c0_i32_62 : i32
    %c1_i32_63 = arith.constant 1 : i32
    %119 = arith.select %118, %c1_i32_63, %c8_i32 : i32
    %120 = vector.broadcast %119 : i32 to vector<8x64xi32>
    %121 = arith.remsi %117, %120 : vector<8x64xi32>
    %c0_i32_64 = arith.constant 0 : i32
    %122 = vector.broadcast %c0_i32_64 : i32 to vector<8x64xi32>
    %123 = arith.cmpi ne, %121, %122 : vector<8x64xi32>
    %c0_i32_65 = arith.constant 0 : i32
    %124 = vector.broadcast %c0_i32_65 : i32 to vector<8x64xi32>
    %125 = arith.cmpi slt, %121, %124 : vector<8x64xi32>
    %c0_i32_66 = arith.constant 0 : i32
    %126 = arith.cmpi slt, %119, %c0_i32_66 : i32
    %127 = vector.broadcast %126 : i1 to vector<8x64xi1>
    %128 = vector.broadcast %127 : vector<8x64xi1> to vector<8x64xi1>
    %129 = arith.xori %125, %128 : vector<8x64xi1>
    %130 = arith.andi %129, %123 : vector<8x64xi1>
    %131 = vector.broadcast %119 : i32 to vector<8x64xi32>
    %132 = arith.addi %121, %131 : vector<8x64xi32>
    %133 = arith.select %130, %132, %121 : vector<8x64xi1>, vector<8x64xi32>
    %c7_i32 = arith.constant 7 : i32
    %134 = vector.broadcast %c7_i32 : i32 to vector<8x64xi32>
    %135 = arith.cmpi eq, %133, %134 : vector<8x64xi32>
    %cst_67 = arith.constant 0.000000e+00 : f32
    %136 = vector.broadcast %cst_67 : f32 to vector<8x64xf32>
    %137 = arith.select %135, %136, %113 : vector<8x64xi1>, vector<8x64xf32>
    %cst_68 = arith.constant 0.000000e+00 : f32
    %138 = vector.broadcast %cst_68 : f32 to vector<8x64xf32>
    %139 = arith.select %135, %138, %116 : vector<8x64xi1>, vector<8x64xf32>
    %140 = tpu.concatenate %101, %110, %137, %139 in 0 : vector<8x64xf32>, vector<8x64xf32>, vector<8x64xf32>, vector<8x64xf32> -> vector<32x64xf32>
    %cst_69 = arith.constant dense<0.000000e+00> : vector<32x64xf32>
    %141 = tpu.matmul %104, %140, %cst_69 {dimension_numbers = #tpu.dot_dimension_numbers<[1], [0], [0], [1], [0, 0, 1, 1], [], []>} : vector<32x32xf32>, vector<32x64xf32>, vector<32x64xf32> -> vector<32x64xf32>
    %142 = vector.extract_strided_slice %141 {offsets = [0, 0], sizes = [8, 64], strides = [1, 1]} : vector<32x64xf32> to vector<8x64xf32>
    %143 = vector.extract_strided_slice %141 {offsets = [8, 0], sizes = [8, 64], strides = [1, 1]} : vector<32x64xf32> to vector<8x64xf32>
    %144 = vector.extract_strided_slice %141 {offsets = [16, 0], sizes = [8, 64], strides = [1, 1]} : vector<32x64xf32> to vector<8x64xf32>
    %145 = vector.extract_strided_slice %141 {offsets = [24, 0], sizes = [8, 64], strides = [1, 1]} : vector<32x64xf32> to vector<8x64xf32>
    %146 = tpu.concatenate %142, %143, %144, %145 in 1 : vector<8x64xf32>, vector<8x64xf32>, vector<8x64xf32>, vector<8x64xf32> -> vector<8x256xf32>
    %cst_70 = arith.constant dense<0.000000e+00> : vector<8x256xf32>
    %147 = tpu.matmul %146, %107, %cst_70 {dimension_numbers = #tpu.dot_dimension_numbers<[1], [0], [0], [1], [0, 0, 1, 1], [], []>} : vector<8x256xf32>, vector<256x256xf32>, vector<8x256xf32> -> vector<8x256xf32>
    %cst_71 = arith.constant dense<0.000000e+00> : vector<8x256xf32>
    %148 = tpu.matmul %105, %103, %cst_71 {dimension_numbers = #tpu.dot_dimension_numbers<[1], [0], [0], [1], [0, 0, 1, 1], [], []>} : vector<8x64xf32>, vector<64x256xf32>, vector<8x256xf32> -> vector<8x256xf32>
    %149 = arith.addf %147, %148 : vector<8x256xf32>
    %150 = vector.broadcast %106 : vector<8x1xf32> to vector<8x256xf32>
    %151 = arith.addf %149, %150 : vector<8x256xf32>
    %152 = vector.extract_strided_slice %151 {offsets = [0, 0], sizes = [8, 16], strides = [1, 1]} : vector<8x256xf32> to vector<8x16xf32>
    %c0_72 = arith.constant 0 : index
    %c0_73 = arith.constant 0 : index
    %c0_74 = arith.constant 0 : index
    %153 = vector.load %arg20[%c0_72, %c0_73, %c0_74] : memref<8x16x16xf32, #tpu.memory_space<vmem>>, vector<8x1x16xf32>
    %154 = vector.shape_cast %153 : vector<8x1x16xf32> to vector<8x16xf32>
    %155 = vector.shape_cast %152 : vector<8x16xf32> to vector<8x1x16xf32>
    tpu.vector_store %arg20[%c0_72, %c0_73, %c0_74], %155 {strides = array<i32>} : memref<8x16x16xf32, #tpu.memory_space<vmem>>, vector<8x1x16xf32>,
    %156 = vector.extract_strided_slice %151 {offsets = [0, 16], sizes = [8, 16], strides = [1, 1]} : vector<8x256xf32> to vector<8x16xf32>
    %c0_75 = arith.constant 0 : index
    %c1 = arith.constant 1 : index
    %c0_76 = arith.constant 0 : index
    %157 = vector.load %arg20[%c0_75, %c1, %c0_76] : memref<8x16x16xf32, #tpu.memory_space<vmem>>, vector<8x1x16xf32>
    %158 = vector.shape_cast %157 : vector<8x1x16xf32> to vector<8x16xf32>
    %159 = vector.shape_cast %156 : vector<8x16xf32> to vector<8x1x16xf32>
    tpu.vector_store %arg20[%c0_75, %c1, %c0_76], %159 {strides = array<i32>} : memref<8x16x16xf32, #tpu.memory_space<vmem>>, vector<8x1x16xf32>,
    %160 = vector.extract_strided_slice %151 {offsets = [0, 32], sizes = [8, 16], strides = [1, 1]} : vector<8x256xf32> to vector<8x16xf32>
    %c0_77 = arith.constant 0 : index
    %c2 = arith.constant 2 : index
    %c0_78 = arith.constant 0 : index
    %161 = vector.load %arg20[%c0_77, %c2, %c0_78] : memref<8x16x16xf32, #tpu.memory_space<vmem>>, vector<8x1x16xf32>
    %162 = vector.shape_cast %161 : vector<8x1x16xf32> to vector<8x16xf32>
    %163 = vector.shape_cast %160 : vector<8x16xf32> to vector<8x1x16xf32>
    tpu.vector_store %arg20[%c0_77, %c2, %c0_78], %163 {strides = array<i32>} : memref<8x16x16xf32, #tpu.memory_space<vmem>>, vector<8x1x16xf32>,
    %164 = vector.extract_strided_slice %151 {offsets = [0, 48], sizes = [8, 16], strides = [1, 1]} : vector<8x256xf32> to vector<8x16xf32>
    %c0_79 = arith.constant 0 : index
    %c3 = arith.constant 3 : index
    %c0_80 = arith.constant 0 : index
    %165 = vector.load %arg20[%c0_79, %c3, %c0_80] : memref<8x16x16xf32, #tpu.memory_space<vmem>>, vector<8x1x16xf32>
    %166 = vector.shape_cast %165 : vector<8x1x16xf32> to vector<8x16xf32>
    %167 = vector.shape_cast %164 : vector<8x16xf32> to vector<8x1x16xf32>
    tpu.vector_store %arg20[%c0_79, %c3, %c0_80], %167 {strides = array<i32>} : memref<8x16x16xf32, #tpu.memory_space<vmem>>, vector<8x1x16xf32>,
    %168 = vector.extract_strided_slice %151 {offsets = [0, 64], sizes = [8, 16], strides = [1, 1]} : vector<8x256xf32> to vector<8x16xf32>
    %c0_81 = arith.constant 0 : index
    %c4 = arith.constant 4 : index
    %c0_82 = arith.constant 0 : index
    %169 = vector.load %arg20[%c0_81, %c4, %c0_82] : memref<8x16x16xf32, #tpu.memory_space<vmem>>, vector<8x1x16xf32>
    %170 = vector.shape_cast %169 : vector<8x1x16xf32> to vector<8x16xf32>
    %171 = vector.shape_cast %168 : vector<8x16xf32> to vector<8x1x16xf32>
    tpu.vector_store %arg20[%c0_81, %c4, %c0_82], %171 {strides = array<i32>} : memref<8x16x16xf32, #tpu.memory_space<vmem>>, vector<8x1x16xf32>,
    %172 = vector.extract_strided_slice %151 {offsets = [0, 80], sizes = [8, 16], strides = [1, 1]} : vector<8x256xf32> to vector<8x16xf32>
    %c0_83 = arith.constant 0 : index
    %c5 = arith.constant 5 : index
    %c0_84 = arith.constant 0 : index
    %173 = vector.load %arg20[%c0_83, %c5, %c0_84] : memref<8x16x16xf32, #tpu.memory_space<vmem>>, vector<8x1x16xf32>
    %174 = vector.shape_cast %173 : vector<8x1x16xf32> to vector<8x16xf32>
    %175 = vector.shape_cast %172 : vector<8x16xf32> to vector<8x1x16xf32>
    tpu.vector_store %arg20[%c0_83, %c5, %c0_84], %175 {strides = array<i32>} : memref<8x16x16xf32, #tpu.memory_space<vmem>>, vector<8x1x16xf32>,
    %176 = vector.extract_strided_slice %151 {offsets = [0, 96], sizes = [8, 16], strides = [1, 1]} : vector<8x256xf32> to vector<8x16xf32>
    %c0_85 = arith.constant 0 : index
    %c6 = arith.constant 6 : index
    %c0_86 = arith.constant 0 : index
    %177 = vector.load %arg20[%c0_85, %c6, %c0_86] : memref<8x16x16xf32, #tpu.memory_space<vmem>>, vector<8x1x16xf32>
    %178 = vector.shape_cast %177 : vector<8x1x16xf32> to vector<8x16xf32>
    %179 = vector.shape_cast %176 : vector<8x16xf32> to vector<8x1x16xf32>
    tpu.vector_store %arg20[%c0_85, %c6, %c0_86], %179 {strides = array<i32>} : memref<8x16x16xf32, #tpu.memory_space<vmem>>, vector<8x1x16xf32>,
    %180 = vector.extract_strided_slice %151 {offsets = [0, 112], sizes = [8, 16], strides = [1, 1]} : vector<8x256xf32> to vector<8x16xf32>
    %c0_87 = arith.constant 0 : index
    %c7 = arith.constant 7 : index
    %c0_88 = arith.constant 0 : index
    %181 = vector.load %arg20[%c0_87, %c7, %c0_88] : memref<8x16x16xf32, #tpu.memory_space<vmem>>, vector<8x1x16xf32>
    %182 = vector.shape_cast %181 : vector<8x1x16xf32> to vector<8x16xf32>
    %183 = vector.shape_cast %180 : vector<8x16xf32> to vector<8x1x16xf32>
    tpu.vector_store %arg20[%c0_87, %c7, %c0_88], %183 {strides = array<i32>} : memref<8x16x16xf32, #tpu.memory_space<vmem>>, vector<8x1x16xf32>,
    %184 = vector.extract_strided_slice %151 {offsets = [0, 128], sizes = [8, 16], strides = [1, 1]} : vector<8x256xf32> to vector<8x16xf32>
    %c0_89 = arith.constant 0 : index
    %c8 = arith.constant 8 : index
    %c0_90 = arith.constant 0 : index
    %185 = vector.load %arg20[%c0_89, %c8, %c0_90] : memref<8x16x16xf32, #tpu.memory_space<vmem>>, vector<8x1x16xf32>
    %186 = vector.shape_cast %185 : vector<8x1x16xf32> to vector<8x16xf32>
    %187 = vector.shape_cast %184 : vector<8x16xf32> to vector<8x1x16xf32>
    tpu.vector_store %arg20[%c0_89, %c8, %c0_90], %187 {strides = array<i32>} : memref<8x16x16xf32, #tpu.memory_space<vmem>>, vector<8x1x16xf32>,
    %188 = vector.extract_strided_slice %151 {offsets = [0, 144], sizes = [8, 16], strides = [1, 1]} : vector<8x256xf32> to vector<8x16xf32>
    %c0_91 = arith.constant 0 : index
    %c9 = arith.constant 9 : index
    %c0_92 = arith.constant 0 : index
    %189 = vector.load %arg20[%c0_91, %c9, %c0_92] : memref<8x16x16xf32, #tpu.memory_space<vmem>>, vector<8x1x16xf32>
    %190 = vector.shape_cast %189 : vector<8x1x16xf32> to vector<8x16xf32>
    %191 = vector.shape_cast %188 : vector<8x16xf32> to vector<8x1x16xf32>
    tpu.vector_store %arg20[%c0_91, %c9, %c0_92], %191 {strides = array<i32>} : memref<8x16x16xf32, #tpu.memory_space<vmem>>, vector<8x1x16xf32>,
    %192 = vector.extract_strided_slice %151 {offsets = [0, 160], sizes = [8, 16], strides = [1, 1]} : vector<8x256xf32> to vector<8x16xf32>
    %c0_93 = arith.constant 0 : index
    %c10 = arith.constant 10 : index
    %c0_94 = arith.constant 0 : index
    %193 = vector.load %arg20[%c0_93, %c10, %c0_94] : memref<8x16x16xf32, #tpu.memory_space<vmem>>, vector<8x1x16xf32>
    %194 = vector.shape_cast %193 : vector<8x1x16xf32> to vector<8x16xf32>
    %195 = vector.shape_cast %192 : vector<8x16xf32> to vector<8x1x16xf32>
    tpu.vector_store %arg20[%c0_93, %c10, %c0_94], %195 {strides = array<i32>} : memref<8x16x16xf32, #tpu.memory_space<vmem>>, vector<8x1x16xf32>,
    %196 = vector.extract_strided_slice %151 {offsets = [0, 176], sizes = [8, 16], strides = [1, 1]} : vector<8x256xf32> to vector<8x16xf32>
    %c0_95 = arith.constant 0 : index
    %c11 = arith.constant 11 : index
    %c0_96 = arith.constant 0 : index
    %197 = vector.load %arg20[%c0_95, %c11, %c0_96] : memref<8x16x16xf32, #tpu.memory_space<vmem>>, vector<8x1x16xf32>
    %198 = vector.shape_cast %197 : vector<8x1x16xf32> to vector<8x16xf32>
    %199 = vector.shape_cast %196 : vector<8x16xf32> to vector<8x1x16xf32>
    tpu.vector_store %arg20[%c0_95, %c11, %c0_96], %199 {strides = array<i32>} : memref<8x16x16xf32, #tpu.memory_space<vmem>>, vector<8x1x16xf32>,
    %200 = vector.extract_strided_slice %151 {offsets = [0, 192], sizes = [8, 16], strides = [1, 1]} : vector<8x256xf32> to vector<8x16xf32>
    %c0_97 = arith.constant 0 : index
    %c12 = arith.constant 12 : index
    %c0_98 = arith.constant 0 : index
    %201 = vector.load %arg20[%c0_97, %c12, %c0_98] : memref<8x16x16xf32, #tpu.memory_space<vmem>>, vector<8x1x16xf32>
    %202 = vector.shape_cast %201 : vector<8x1x16xf32> to vector<8x16xf32>
    %203 = vector.shape_cast %200 : vector<8x16xf32> to vector<8x1x16xf32>
    tpu.vector_store %arg20[%c0_97, %c12, %c0_98], %203 {strides = array<i32>} : memref<8x16x16xf32, #tpu.memory_space<vmem>>, vector<8x1x16xf32>,
    %204 = vector.extract_strided_slice %151 {offsets = [0, 208], sizes = [8, 16], strides = [1, 1]} : vector<8x256xf32> to vector<8x16xf32>
    %c0_99 = arith.constant 0 : index
    %c13 = arith.constant 13 : index
    %c0_100 = arith.constant 0 : index
    %205 = vector.load %arg20[%c0_99, %c13, %c0_100] : memref<8x16x16xf32, #tpu.memory_space<vmem>>, vector<8x1x16xf32>
    %206 = vector.shape_cast %205 : vector<8x1x16xf32> to vector<8x16xf32>
    %207 = vector.shape_cast %204 : vector<8x16xf32> to vector<8x1x16xf32>
    tpu.vector_store %arg20[%c0_99, %c13, %c0_100], %207 {strides = array<i32>} : memref<8x16x16xf32, #tpu.memory_space<vmem>>, vector<8x1x16xf32>,
    %208 = vector.extract_strided_slice %151 {offsets = [0, 224], sizes = [8, 16], strides = [1, 1]} : vector<8x256xf32> to vector<8x16xf32>
    %c0_101 = arith.constant 0 : index
    %c14 = arith.constant 14 : index
    %c0_102 = arith.constant 0 : index
    %209 = vector.load %arg20[%c0_101, %c14, %c0_102] : memref<8x16x16xf32, #tpu.memory_space<vmem>>, vector<8x1x16xf32>
    %210 = vector.shape_cast %209 : vector<8x1x16xf32> to vector<8x16xf32>
    %211 = vector.shape_cast %208 : vector<8x16xf32> to vector<8x1x16xf32>
    tpu.vector_store %arg20[%c0_101, %c14, %c0_102], %211 {strides = array<i32>} : memref<8x16x16xf32, #tpu.memory_space<vmem>>, vector<8x1x16xf32>,
    %212 = vector.extract_strided_slice %151 {offsets = [0, 240], sizes = [8, 16], strides = [1, 1]} : vector<8x256xf32> to vector<8x16xf32>
    %c0_103 = arith.constant 0 : index
    %c15 = arith.constant 15 : index
    %c0_104 = arith.constant 0 : index
    %213 = vector.load %arg20[%c0_103, %c15, %c0_104] : memref<8x16x16xf32, #tpu.memory_space<vmem>>, vector<8x1x16xf32>
    %214 = vector.shape_cast %213 : vector<8x1x16xf32> to vector<8x16xf32>
    %215 = vector.shape_cast %212 : vector<8x16xf32> to vector<8x1x16xf32>
    tpu.vector_store %arg20[%c0_103, %c15, %c0_104], %215 {strides = array<i32>} : memref<8x16x16xf32, #tpu.memory_space<vmem>>, vector<8x1x16xf32>,
    %c0_105 = arith.constant 0 : index
    %c0_106 = arith.constant 0 : index
    %c0_107 = arith.constant 0 : index
    %216 = vector.load %arg20[%c0_105, %c0_106, %c0_107] : memref<8x16x16xf32, #tpu.memory_space<vmem>>, vector<1x16x16xf32>
    %217 = vector.shape_cast %216 : vector<1x16x16xf32> to vector<16x16xf32>
    %c1_108 = arith.constant 1 : index
    %c0_109 = arith.constant 0 : index
    %c0_110 = arith.constant 0 : index
    %218 = vector.load %arg20[%c1_108, %c0_109, %c0_110] : memref<8x16x16xf32, #tpu.memory_space<vmem>>, vector<1x16x16xf32>
    %219 = vector.shape_cast %218 : vector<1x16x16xf32> to vector<16x16xf32>
    %c2_111 = arith.constant 2 : index
    %c0_112 = arith.constant 0 : index
    %c0_113 = arith.constant 0 : index
    %220 = vector.load %arg20[%c2_111, %c0_112, %c0_113] : memref<8x16x16xf32, #tpu.memory_space<vmem>>, vector<1x16x16xf32>
    %221 = vector.shape_cast %220 : vector<1x16x16xf32> to vector<16x16xf32>
    %c3_114 = arith.constant 3 : index
    %c0_115 = arith.constant 0 : index
    %c0_116 = arith.constant 0 : index
    %222 = vector.load %arg20[%c3_114, %c0_115, %c0_116] : memref<8x16x16xf32, #tpu.memory_space<vmem>>, vector<1x16x16xf32>
    %223 = vector.shape_cast %222 : vector<1x16x16xf32> to vector<16x16xf32>
    %c4_117 = arith.constant 4 : index
    %c0_118 = arith.constant 0 : index
    %c0_119 = arith.constant 0 : index
    %224 = vector.load %arg20[%c4_117, %c0_118, %c0_119] : memref<8x16x16xf32, #tpu.memory_space<vmem>>, vector<1x16x16xf32>
    %225 = vector.shape_cast %224 : vector<1x16x16xf32> to vector<16x16xf32>
    %c5_120 = arith.constant 5 : index
    %c0_121 = arith.constant 0 : index
    %c0_122 = arith.constant 0 : index
    %226 = vector.load %arg20[%c5_120, %c0_121, %c0_122] : memref<8x16x16xf32, #tpu.memory_space<vmem>>, vector<1x16x16xf32>
    %227 = vector.shape_cast %226 : vector<1x16x16xf32> to vector<16x16xf32>
    %c6_123 = arith.constant 6 : index
    %c0_124 = arith.constant 0 : index
    %c0_125 = arith.constant 0 : index
    %228 = vector.load %arg20[%c6_123, %c0_124, %c0_125] : memref<8x16x16xf32, #tpu.memory_space<vmem>>, vector<1x16x16xf32>
    %229 = vector.shape_cast %228 : vector<1x16x16xf32> to vector<16x16xf32>
    %c7_126 = arith.constant 7 : index
    %c0_127 = arith.constant 0 : index
    %c0_128 = arith.constant 0 : index
    %230 = vector.load %arg20[%c7_126, %c0_127, %c0_128] : memref<8x16x16xf32, #tpu.memory_space<vmem>>, vector<1x16x16xf32>
    %231 = vector.shape_cast %230 : vector<1x16x16xf32> to vector<16x16xf32>
    %232 = tpu.concatenate %217, %219, %221, %223, %225, %227, %229, %231 in 0 : vector<16x16xf32>, vector<16x16xf32>, vector<16x16xf32>, vector<16x16xf32>, vector<16x16xf32>, vector<16x16xf32>, vector<16x16xf32>, vector<16x16xf32> -> vector<128x16xf32>
    %c0_129 = arith.constant 0 : index
    %c0_130 = arith.constant 0 : index
    %233 = vector.load %arg17[%c0_129, %c0_130] : memref<16x64xf32, #tpu.memory_space<vmem>>, vector<16x64xf32>
    %cst_131 = arith.constant dense<0.000000e+00> : vector<128x64xf32>
    %234 = tpu.matmul %232, %233, %cst_131 {dimension_numbers = #tpu.dot_dimension_numbers<[1], [0], [0], [1], [0, 0, 1, 1], [], []>} : vector<128x16xf32>, vector<16x64xf32>, vector<128x64xf32> -> vector<128x64xf32>
    %c0_132 = arith.constant 0 : index
    %c0_133 = arith.constant 0 : index
    %235 = vector.load %arg18[%c0_132, %c0_133] : memref<512x128xf32, #tpu.memory_space<vmem>>, vector<512x128xf32>
    %cst_134 = arith.constant dense<0.000000e+00> : vector<512x64xf32>
    %236 = tpu.matmul %235, %234, %cst_134 {dimension_numbers = #tpu.dot_dimension_numbers<[1], [0], [0], [1], [0, 0, 1, 1], [], []>} : vector<512x128xf32>, vector<128x64xf32>, vector<512x64xf32> -> vector<512x64xf32>
    %c0_135 = arith.constant 0 : index
    %c0_136 = arith.constant 0 : index
    %c0_137 = arith.constant 0 : index
    %237 = vector.load %arg19[%c0_135, %c0_136, %c0_137] : memref<1x512x64xf32, #tpu.memory_space<vmem>>, vector<1x512x64xf32>
    %238 = vector.shape_cast %237 : vector<1x512x64xf32> to vector<512x64xf32>
    %239 = vector.shape_cast %236 : vector<512x64xf32> to vector<1x512x64xf32>
    tpu.vector_store %arg19[%c0_135, %c0_136, %c0_137], %239 {strides = array<i32>} : memref<1x512x64xf32, #tpu.memory_space<vmem>>, vector<1x512x64xf32>,
    return
  }
  func.func @transform_0(%arg0: i32) -> (i32, i32, i32) {
    %c0_i32 = arith.constant 0 : i32
    %c0_i32_0 = arith.constant 0 : i32
    %c0_i32_1 = arith.constant 0 : i32
    return %arg0, %c0_i32, %c0_i32_0 : i32, i32, i32
  }
  func.func @transform_1(%arg0: i32) -> (i32, i32, i32) {
    %c0_i32 = arith.constant 0 : i32
    %c0_i32_0 = arith.constant 0 : i32
    %c0_i32_1 = arith.constant 0 : i32
    return %arg0, %c0_i32, %c0_i32_0 : i32, i32, i32
  }
  func.func @transform_2(%arg0: i32) -> (i32, i32, i32) {
    %c0_i32 = arith.constant 0 : i32
    %c0_i32_0 = arith.constant 0 : i32
    %c0_i32_1 = arith.constant 0 : i32
    return %arg0, %c0_i32, %c0_i32_0 : i32, i32, i32
  }
  func.func @transform_3(%arg0: i32) -> (i32, i32, i32) {
    %c0_i32 = arith.constant 0 : i32
    %c0_i32_0 = arith.constant 0 : i32
    %c0_i32_1 = arith.constant 0 : i32
    return %arg0, %c0_i32, %c0_i32_0 : i32, i32, i32
  }
  func.func @transform_4(%arg0: i32) -> (i32, i32) {
    %c0_i32 = arith.constant 0 : i32
    %c0_i32_0 = arith.constant 0 : i32
    %c0_i32_1 = arith.constant 0 : i32
    return %c0_i32, %c0_i32_0 : i32, i32
  }
  func.func @transform_5(%arg0: i32) -> (i32, i32) {
    %c0_i32 = arith.constant 0 : i32
    %c0_i32_0 = arith.constant 0 : i32
    %c0_i32_1 = arith.constant 0 : i32
    return %c0_i32, %c0_i32_0 : i32, i32
  }
  func.func @transform_6(%arg0: i32) -> (i32, i32) {
    %c0_i32 = arith.constant 0 : i32
    %c0_i32_0 = arith.constant 0 : i32
    %c0_i32_1 = arith.constant 0 : i32
    return %c0_i32, %c0_i32_0 : i32, i32
  }
  func.func @transform_7(%arg0: i32) -> (i32, i32) {
    %c0_i32 = arith.constant 0 : i32
    %c0_i32_0 = arith.constant 0 : i32
    %c0_i32_1 = arith.constant 0 : i32
    return %c0_i32, %c0_i32_0 : i32, i32
  }
  func.func @transform_8(%arg0: i32) -> (i32, i32) {
    %c0_i32 = arith.constant 0 : i32
    %c0_i32_0 = arith.constant 0 : i32
    %c0_i32_1 = arith.constant 0 : i32
    return %c0_i32, %c0_i32_0 : i32, i32
  }
  func.func @transform_9(%arg0: i32) -> (i32, i32) {
    %c0_i32 = arith.constant 0 : i32
    %c0_i32_0 = arith.constant 0 : i32
    %c0_i32_1 = arith.constant 0 : i32
    return %c0_i32, %c0_i32_0 : i32, i32
  }
  func.func @transform_10(%arg0: i32) -> (i32, i32) {
    %c0_i32 = arith.constant 0 : i32
    %c0_i32_0 = arith.constant 0 : i32
    %c0_i32_1 = arith.constant 0 : i32
    return %c0_i32, %c0_i32_0 : i32, i32
  }
  func.func @transform_11(%arg0: i32) -> (i32, i32) {
    %c0_i32 = arith.constant 0 : i32
    %c0_i32_0 = arith.constant 0 : i32
    %c0_i32_1 = arith.constant 0 : i32
    return %c0_i32, %c0_i32_0 : i32, i32
  }
  func.func @transform_12(%arg0: i32) -> (i32, i32) {
    %c0_i32 = arith.constant 0 : i32
    %c0_i32_0 = arith.constant 0 : i32
    %c0_i32_1 = arith.constant 0 : i32
    return %c0_i32, %c0_i32_0 : i32, i32
  }
  func.func @transform_13(%arg0: i32) -> (i32, i32) {
    %c0_i32 = arith.constant 0 : i32
    %c0_i32_0 = arith.constant 0 : i32
    %c0_i32_1 = arith.constant 0 : i32
    return %c0_i32, %c0_i32_0 : i32, i32
  }
  func.func @transform_14(%arg0: i32) -> (i32, i32) {
    %c0_i32 = arith.constant 0 : i32
    %c0_i32_0 = arith.constant 0 : i32
    %c0_i32_1 = arith.constant 0 : i32
    return %c0_i32, %c0_i32_0 : i32, i32
  }
  func.func @transform_15(%arg0: i32) -> (i32, i32) {
    %c0_i32 = arith.constant 0 : i32
    %c0_i32_0 = arith.constant 0 : i32
    %c0_i32_1 = arith.constant 0 : i32
    return %c0_i32, %c0_i32_0 : i32, i32
  }
  func.func @transform_16(%arg0: i32) -> (i32, i32) {
    %c0_i32 = arith.constant 0 : i32
    %c0_i32_0 = arith.constant 0 : i32
    %c0_i32_1 = arith.constant 0 : i32
    return %c0_i32, %c0_i32_0 : i32, i32
  }
  func.func @transform_17(%arg0: i32) -> (i32, i32) {
    %c0_i32 = arith.constant 0 : i32
    %c0_i32_0 = arith.constant 0 : i32
    %c0_i32_1 = arith.constant 0 : i32
    return %c0_i32, %c0_i32_0 : i32, i32
  }
  func.func @transform_18(%arg0: i32) -> (i32, i32, i32) {
    %c0_i32 = arith.constant 0 : i32
    %c0_i32_0 = arith.constant 0 : i32
    %c0_i32_1 = arith.constant 0 : i32
    return %arg0, %c0_i32, %c0_i32_0 : i32, i32, i32
  }
}

</mosaic_0001>

<bundles_post_ra>
// kernel: _lambda_.1
= control target key start
LH: loop header
LB: loop body
LE: loop exit
PB: predicated region body
PF: predicated region fallthrough
CT: control target
= control target key end

     0   :  { %s3947_s0 = inlined_call_operand.vmem [shape: f32[2,8,4], index: 0, kind: input, shape index: {}]   ;;  %s3948_s1 = inlined_call_operand.vmem [shape: f32[2,256,16], index: 1, kind: input, shape index: {}]   ;;  %s3949_s2 = inlined_call_operand.vmem [shape: f32[2,128,64], index: 2, kind: input, shape index: {}]   ;;  %s3950_s3 = inlined_call_operand.vmem [shape: f32[2,64,256], index: 3, kind: input, shape index: {}]   ;;  %s3951_s4 = inlined_call_operand.vmem [shape: f32[32,32], index: 4, kind: input, shape index: {}]   ;;  %s3952_s5 = inlined_call_operand.vmem [shape: f32[8,256], index: 5, kind: input, shape index: {}]   ;;  %s3953_s6 = inlined_call_operand.vmem [shape: f32[8,1], index: 6, kind: input, shape index: {}]   ;;  %s3954_s7 = inlined_call_operand.vmem [shape: f32[16,16], index: 7, kind: input, shape index: {}]   ;;  %s3955_s8 = inlined_call_operand.vmem [shape: f32[32,32], index: 8, kind: input, shape index: {}]   ;;  %s3956_s9 = inlined_call_operand.vmem [shape: f32[8,128], index: 9, kind: input, shape index: {}]   ;;  %s3957_s10 = inlined_call_operand.vmem [shape: f32[8,1], index: 10, kind: input, shape index: {}]   ;;  %s3958_s11 = inlined_call_operand.vmem [shape: f32[64,64], index: 11, kind: input, shape index: {}]   ;;  %s3959_s12 = inlined_call_operand.vmem [shape: f32[32,32], index: 12, kind: input, shape index: {}]   ;;  %s3960_s13 = inlined_call_operand.vmem [shape: f32[8,64], index: 13, kind: input, shape index: {}]   ;;  %s3961_s14 = inlined_call_operand.vmem [shape: f32[8,1], index: 14, kind: input, shape index: {}]   ;;  %s3962_s15 = inlined_call_operand.vmem [shape: f32[256,256], index: 15, kind: input, shape index: {}]   ;;  %s3963_s16 = inlined_call_operand.vmem [shape: f32[16,64], index: 16, kind: input, shape index: {}]   ;;  %s3964_s17 = inlined_call_operand.vmem [shape: f32[512,128], index: 17, kind: input, shape index: {}]   ;;  %s3965_s18 = inlined_call_operand.hbm [shape: f32[2,512,64], index: 18, kind: output, shape index: {}]  }
   0x1   :  { %3978 = sst [smem:[#allocation11_spill]] %s3947_s0 }
   0x2   :  { %3979 = sst [smem:[#allocation12_spill]] %s3948_s1 }
   0x3   :  { %3980 = sst [smem:[#allocation13_spill]] %s3949_s2 }
   0x4   :  { %3981 = sst [smem:[#allocation14_spill]] %s3950_s3 }
   0x5   :  { %3982 = sst [smem:[#allocation15_spill]] %s3951_s4 }
   0x6   :  { %23 = vsyncpa [#allocation4], 0 }
   0x7   :  { %25 = vsyncpa [#allocation4 + $0x1], 0  ;;  %s2764_s27 = smov 0   ;;  %s2766_s28 = smov 0  }
   0x8   :  { %s2768_s29 = smov 0   ;;  %s2770_s30 = smov 0  }
   0x9 LB: > { %3983 = sst [smem:[#allocation6_spill]] %s2636_s27  ;;  %s2785_s0 = sadd.s32 4294967295, %s2648_s30   ;;  %s2648_s30 = sphi %s2770_s30, %s4001_s30   ;;  %s2644_s29 = sphi %s2768_s29, %s4003_s29   ;;  %s2640_s28 = sphi %s2766_s28, %s4005_s28   ;;  %s2636_s27 = sphi %s2764_s27, %s4004_s27  }
   0xa   : > { %3984 = sst [smem:[#allocation7_spill]] %s2644_s29  ;;  %s2401_s19 = sadd.s32 4294967294, %s2648_s30  }
   0xb   : > { %s2789_s1 = sadd.s32 1, %s2648_s30   ;;  %s436_s20 = sadd.s32 1, %s2644_s29 }
   0xc   : > { %3985 = sst [smem:[#allocation8_spill]] %s2789_s1  ;;  %s433_s21 = ssub.s32 %s2648_s30, %s2789_s1 }
   0xd   : > { %p446_p0 = scmp.ne.s32.totalorder %s2644_s29, %s2640_s28  ;;  %p434_p1 = scmp.eq.s32.totalorder %s433_s21, 0 }
   0xe   : > { %p447_p2 = scmp.eq.s32.totalorder %s2785_s0, 1  ;;  %p452_p3 = scmp.ne.s32.totalorder %s2640_s28, %s2636_s27 }
   0xf   : > { %p453_p4 = scmp.eq.s32.totalorder %s2401_s19, 1  ;;  %p2404_p7 = scmp.ge.s32.totalorder %s2648_s30, 1 }
  0x10   : > { %s2800_s22 = scalar_select %p434_p1, %s2644_s29, %s436_s20  }
  0x11   : > { %p2802_p5 = por %p447_p2, %p446_p0  ;;  %p2806_p6 = por %p453_p4, %p452_p3 }
  0x12   : > { %3986 = sst [smem:[#allocation9_spill]] %s2800_s22  ;;  %p544_p8 = scmp.lt.s32.totalorder %s2648_s30, 3 }
  0x13   : > { %s3988_s23 = scalar_select %p2806_p6, 1, 0 }
  0x14   : > { %p545_p9 = pnand %p2404_p7, %p544_p8 }
  0x15   : > { %3989 = sst [smem:[#allocation10_spill]] %s3988_s23  ;;  %p612_p10 = scmp.lt.s32.totalorder (!%p545_p9), %s2785_s0, 1 }
  0x16   : > { %548 = sbr.rel (%p545_p9) target bundleno = 2476 (0x9ac), region = 92  ;;  %s3990_s20 = sld [smem:[#allocation11_spill]] (!%p545_p9) }
  0x17   : > { %s2650_s22 = smov (!%p545_p9), 125   ;;  %s2651_s29 = smov (!%p545_p9), 126  }
  0x18   : > { %s3969_s1 = smov (!%p545_p9), 127   ;;  %s3991_s4 = sld [smem:[#allocation15_spill]] (!%p545_p9) }
  0x19   : > { %s3992_s27 = sld [smem:[#allocation12_spill]] (!%p545_p9)  ;;  %s2655_s23 = smov (!%p545_p9), 12  }
  0x1a   : > { %s3995_s3 = sld [smem:[#allocation14_spill]] (!%p545_p9)  ;;  %s2665_s19 = smov (!%p545_p9), 80  }
  0x1b   : > { %s2814_s24 = scalar_select %p612_p10, %s2785_s0, 1  ;;  %v689_v1 = vlaneseq  ;;  %vm687_vm0 = vcmask 7168   ;;  %vm682_vm2 = vcmask 23552   ;;  %vm677_vm3 = vcmask 15360   ;;  %v672_v46 = vld [vmem:[%s3954_s7 + $0x8] sm:$0xff]  ;;  %v671_v49 = vld [vmem:[%s3954_s7] sm:$0xff] }
  0x1c   : > { %vm706_vm4 = vcmask 261120   ;;  %v669_v47 = vld [vmem:[%s3952_s5 + $0x8] sm:$0xff]  ;;  %824 = vmatpush.msra.mxu3 %v672_v46  ;;  %v668_v52 = vld [vmem:[%s3952_s5] sm:$0xff]  ;;  %v2656_v53 = vmov 0   ;;  %vm760_vm5 = vcmask 31744   ;;  %vm762_vm6 = vcmask 64512  }
  0x1d   : > { %s2406_s25 = sshll.u32 %s2814_s24, 3  ;;  %v2821_v2 = vand.u32 127, %v689_v1  ;;  %2578 = vset.pattern.permute.xlu0 %v2656_v53  ;;  %v670_v54 = vld [vmem:[%s3953_s6] sm:$0xff]  ;;  %2579 = vset.pattern.permute.xlu2 %v2656_v53  ;;  %vm764_vm7 = vcmask 97280   ;;  %vm806_vm8 = vcmask 130048   ;;  %vm879_vm9 = vcmask 89088  }
  0x1e   : > { %s615_s21 = scalar_lea.vmem %s3990_s20, %s2406_s25  ;;  %v664_v9 = vld [vmem:[%s3991_s4] sm:$0xff]  ;;  %v665_v10 = vld [vmem:[%s3991_s4 + $0x8] sm:$0xff]  ;;  %v666_v11 = vld [vmem:[%s3991_s4 + $0x10] sm:$0xff]  ;;  %825 = vmatpush.msra.mxu3 %v671_v49  ;;  %2585 = vset.pattern.permute.xlu1 %v2656_v53  ;;  %s2657_s20 = smov 123   ;;  %vm874_vm11 = vcmask 121856   ;;  %vm951_vm12 = vcmask 392192  }
  0x1f   : > { %v631_v0 = vld [vmem:[%s615_s21] sm:$0xff]  ;;  %v695_v3 = vand.u32 1, %v2821_v2  ;;  %v667_v12 = vld [vmem:[%s3991_s4 + $0x18] sm:$0xff]  ;;  %s2658_s21 = smov 124   ;;  %vm973_vm13 = vcmask 523264   ;;  %s2663_s4 = smov 119  }
  0x20   : > { %684 = vrot.lane.b32.xlu0 %v631_v0, %s2650_s22  ;;  %674 = vrot.lane.b32.xlu1 %v631_v0, %s2651_s29  ;;  %s2465_s29 = sshll.u32 %s2814_s24, 8  ;;  %s3976_s22 = smov 32   ;;  %vm1103_vm14 = vcmask 449536  }
  0x21   : > { %vm2469_vm1 = vcmp.ne.s32.totalorder %v695_v3, 1  ;;  %s2844_s25 = scalar_lea.vmem %s3992_s27, %s2465_s29  ;;  %s2653_s27 = smov 4  }
  0x22   : > { %v663_v13 = vld [vmem:[%s2844_s25 + $0xf8] sm:$0xff]  ;;  %v662_v14 = vld [vmem:[%s2844_s25 + $0xf0] sm:$0xff]  ;;  %v661_v17 = vld [vmem:[%s2844_s25 + $0xe8] sm:$0xff]  ;;  %s3974_s29 = smov 16   ;;  %s2468_s26 = sshll.u32 %s2785_s0, 9 }
  0x23   : > { %786 = vmatpush.msra.mxu2 %v663_v13  ;;  %v647_v15 = vld [vmem:[%s2844_s25 + $0x78] sm:$0xff]  ;;  %v646_v16 = vld [vmem:[%s2844_s25 + $0x70] sm:$0xff]  ;;  %v645_v18 = vld [vmem:[%s2844_s25 + $0x68] sm:$0xff] }
  0x24   : > { %v660_v19 = vld [vmem:[%s2844_s25 + $0xe0] sm:$0xff]  ;;  %v659_v21 = vld [vmem:[%s2844_s25 + $0xd8] sm:$0xff]  ;;  %v658_v24 = vld [vmem:[%s2844_s25 + $0xd0] sm:$0xff] }
  0x25   : > { %787 = vmatpush.msra.mxu2 %v662_v14  ;;  %v644_v20 = vld [vmem:[%s2844_s25 + $0x60] sm:$0xff]  ;;  %v643_v23 = vld [vmem:[%s2844_s25 + $0x58] sm:$0xff]  ;;  %v642_v25 = vld [vmem:[%s2844_s25 + $0x50] sm:$0xff] }
  0x26   : > { %v657_v26 = vld [vmem:[%s2844_s25 + $0xc8] sm:$0xff]  ;;  %v656_v28 = vld [vmem:[%s2844_s25 + $0xc0] sm:$0xff]  ;;  %v655_v30 = vld [vmem:[%s2844_s25 + $0xb8] sm:$0xff] }
  0x27   : > { %788 = vmatpush.msra.mxu2 %v661_v17  ;;  %v641_v27 = vld [vmem:[%s2844_s25 + $0x48] sm:$0xff]  ;;  %v640_v29 = vld [vmem:[%s2844_s25 + $0x40] sm:$0xff]  ;;  %v639_v32 = vld [vmem:[%s2844_s25 + $0x38] sm:$0xff] }
  0x28   : > { %679 = vrot.lane.b32.xlu0 %v631_v0, %s3969_s1  ;;  %v654_v33 = vld [vmem:[%s2844_s25 + $0xb0] sm:$0xff]  ;;  %v653_v34 = vld [vmem:[%s2844_s25 + $0xa8] sm:$0xff]  ;;  %v652_v35 = vld [vmem:[%s2844_s25 + $0xa0] sm:$0xff]  ;;  %s3973_s1 = smov 8  }
  0x29   : > { %789 = vmatpush.msra.mxu2 %v660_v19  ;;  %v638_v38 = vld [vmem:[%s2844_s25 + $0x30] sm:$0xff]  ;;  %v651_v39 = vld [vmem:[%s2844_s25 + $0x98] sm:$0xff]  ;;  %v637_v40 = vld [vmem:[%s2844_s25 + $0x28] sm:$0xff] }
  0x2a   : > { %v650_v41 = vld [vmem:[%s2844_s25 + $0x90] sm:$0xff]  ;;  %v636_v42 = vld [vmem:[%s2844_s25 + $0x20] sm:$0xff]  ;;  %v649_v43 = vld [vmem:[%s2844_s25 + $0x88] sm:$0xff] }
  0x2b   : > { %790 = vmatpush.msra.mxu2 %v659_v21  ;;  %v635_v44 = vld [vmem:[%s2844_s25 + $0x18] sm:$0xff]  ;;  %v648_v45 = vld [vmem:[%s2844_s25 + $0x80] sm:$0xff]  ;;  %v634_v48 = vld [vmem:[%s2844_s25 + $0x10] sm:$0xff] }
  0x2c   : > { %v633_v50 = vld [vmem:[%s2844_s25 + $0x8] sm:$0xff]  ;;  %v632_v51 = vld [vmem:[%s2844_s25] sm:$0xff]  ;;  %s3993_s25 = smov 127   ;;  %v854_v13 = vld [vmem:[%s3955_s8 + $0x10] sm:$0xff] }
  0x2d   : > { %791 = vmatpush.msra.mxu2 %v658_v24  ;;  %v855_v14 = vld [vmem:[%s3955_s8 + $0x18] sm:$0xff] }
  0x2e   : > { %v865_v19 = vld [vmem:[%s3958_s11 + $0x38] sm:$0xff] }
  0x2f   : > { %792 = vmatpush.msra.mxu2 %v657_v26  ;;  %v862_v26 = vld [vmem:[%s3958_s11 + $0x20] sm:$0xff] }
  0x30   : > { %832 = vperm.xlu0 %2578, %v670_v54  }
  0x31   : > { %793 = vmatpush.msra.mxu2 %v656_v28  ;;  %v861_v28 = vld [vmem:[%s3958_s11 + $0x18] sm:$0xff] }
  0x33   : > { %794 = vmatpush.msra.mxu2 %v655_v30  ;;  %v860_v30 = vld [vmem:[%s3958_s11 + $0x10] sm:$0xff] }
  0x35   : > { %795 = vmatpush.msra.mxu2 %v654_v33 }
  0x37   : > { %796 = vmatpush.msra.mxu2 %v653_v34 }
  0x39   : > { %797 = vmatpush.msra.mxu2 %v652_v35  ;;  %v859_v35 = vld [vmem:[%s3958_s11 + $0x8] sm:$0xff] }
  0x3b   : > { %798 = vmatpush.msra.mxu2 %v651_v39 }
  0x3d   : > { %799 = vmatpush.msra.mxu2 %v650_v41 }
  0x3f   : > { %800 = vmatpush.msra.mxu2 %v649_v43 }
  0x41   : > { %801 = vmatpush.msra.mxu2 %v648_v45 }
  0x42   : > { %802 = vmatmul.f32.vlgmr.msra.gmra.mxu2 %v669_v47 }
  0x92   : > { %v685_v4 = vpop.permute.xlu0 %684  ;;  %v675_v8 = vpop.permute.xlu1 %674 }
  0x93   : > { %v688_v5 = vsel %vm687_vm0, %v685_v4, 0.0  ;;  %vm1098_vm0 = vcmask 515072  }
  0x94   : > { %2414 = vmatpush.msk.msra.mxu1 %vm2469_vm1, %v688_v5  ;;  %v885_v5 = vand.u32 3, %v2821_v2 }
  0x96   : > { %vm2470_vm10 = vcmp.ne.s32.totalorder %v885_v5, 3 }
  0x9a   : > { %v680_v6 = vpop.permute.xlu0 %679 }
  0x9b   : > { %v683_v7 = vsel %vm682_vm2, %v680_v6, 0.0  ;;  %vm1316_vm2 = vcmask 122880  }
  0x9c   : > { %2416 = vmatpush.msk.msra.mxu1 %vm2469_vm1, %v683_v7  ;;  %vm1093_vm1 = vcmask 457728  }
  0x9e   : > { %2417 = vmatpush.msk.msra.mxu1 %vm677_vm3, %v675_v8 }
  0xa0   : > { %734 = vmatpush.msra.mxu1 %v631_v0 }
  0xa1   : > { %2418 = vmatmul.msk.f32.vlgmr.msra.gmra.mxu1 %vm706_vm4, %v664_v9 }
  0xa2   : > { %766 = vmatpush.msrb.mxu1 %v647_v15  ;;  %v833_v1 = vpop.permute.xlu0 %832 }
  0xa4   : > { %767 = vmatpush.msrb.mxu1 %v646_v16 }
  0xa6   : > { %768 = vmatpush.msrb.mxu1 %v645_v18 }
  0xa8   : > { %769 = vmatpush.msrb.mxu1 %v644_v20  ;;  %v864_v20 = vld [vmem:[%s3958_s11 + $0x30] sm:$0xff] }
  0xa9   : > { %2419 = vmatmul.msk.f32.gmra.mxu1 %vm706_vm4, %v665_v10 }
  0xaa   : > { %770 = vmatpush.msrb.mxu1 %v643_v23  ;;  %v863_v23 = vld [vmem:[%s3958_s11 + $0x28] sm:$0xff] }
  0xac   : > { %771 = vmatpush.msrb.mxu1 %v642_v25 }
  0xae   : > { %772 = vmatpush.msrb.mxu1 %v641_v27 }
  0xb0   : > { %773 = vmatpush.msrb.mxu1 %v640_v29 }
  0xb1   : > { %2420 = vmatmul.msk.f32.gmra.mxu1 %vm706_vm4, %v666_v11  ;;  %v852_v11 = vld [vmem:[%s3955_s8] sm:$0xff] }
  0xb2   : > { %774 = vmatpush.msrb.mxu1 %v639_v32 }
  0xb4   : > { %775 = vmatpush.msrb.mxu1 %v638_v38 }
  0xb6   : > { %776 = vmatpush.msrb.mxu1 %v637_v40 }
  0xb8   : > { %777 = vmatpush.msrb.mxu1 %v636_v42  ;;  %v857_v42 = vld [vmem:[%s3957_s10] sm:$0xff] }
  0xb9   : > { %2421 = vmatmul.msk.f32.gmra.mxu1 %vm706_vm4, %v667_v12  ;;  %v853_v12 = vld [vmem:[%s3955_s8 + $0x8] sm:$0xff] }
  0xba   : > { %778 = vmatpush.msrb.mxu1 %v635_v44  ;;  %v856_v44 = vld [vmem:[%s3956_s9] sm:$0xff] }
  0xbc   : > { %779 = vmatpush.msrb.mxu1 %v634_v48 }
  0xbe   : > { %780 = vmatpush.msrb.mxu1 %v633_v50 }
  0xc0   : > { %781 = vmatpush.msrb.mxu1 %v632_v51 }
  0xc1   : > { %782 = vmatmul.f32.vlgmr.msrb.gmra.mxu1 %v668_v52 }
  0xc5   : > { %v803_v62 = vpop.f32.mrf.mxu2 }
 0x11e   : > { %v2855_v22 = vpop.f32.mrf.mxu1 }
 0x126   : > { %v739_v31 = vpop.f32.mrf.mxu1 }
 0x127   : > { %749 = vrot.lane.b32.xlu1 %v739_v31, %s2653_s27  ;;  %s2661_s27 = smov 48  }
 0x12e   : > { %v742_v36 = vpop.f32.mrf.mxu1 }
 0x12f   : > { %753 = vrot.lane.b32.xlu2 %v742_v36, %s3973_s1  ;;  %s3996_s1 = smov 32  }
 0x136   : > { %v745_v37 = vpop.f32.mrf.mxu1 }
 0x137   : > { %757 = vrot.lane.b32.xlu2 %v745_v37, %s2655_s23  ;;  %s2466_s23 = sshll.u32 %s2814_s24, 7  ;;  %v858_v37 = vld [vmem:[%s3958_s11] sm:$0xff]  ;;  %s3997_s24 = smov 16  }
 0x13e   : > { %v783_v61 = vpop.f32.mrf.mxu1 }
 0x13f   : > { %v804_v63 = vadd.f32 %v803_v62, %v783_v61  ;;  %v1019_v62 = vld [vmem:[%s3959_s12] sm:$0xff] }
 0x189   : > { %v754_v55 = vpop.permute.xlu2 %753 }
 0x191   : > { %v758_v57 = vpop.permute.xlu2 %757 }
 0x199   : > { %v750_v56 = vpop.permute.xlu1 %749 }
 0x19a   : > { %v761_v58 = vsel %vm760_vm5, %v2855_v22, %v750_v56  ;;  %v1109_v56 = vand.u32 7, %v2821_v2  ;;  %v1020_v2 = vld [vmem:[%s3959_s12 + $0x8] sm:$0xff] }
 0x19b   : > { %v763_v59 = vsel %vm762_vm6, %v761_v58, %v754_v55 }
 0x19c   : > { %v765_v60 = vsel %vm764_vm7, %v763_v59, %v758_v57  ;;  %vm2471_vm15 = vcmp.ne.s32.totalorder %v1109_v56, 7  ;;  %v1076_v56 = vld [vmem:[%s3962_s15 + $0x198] sm:$0xff] }
 0x19d   : > { %2422 = vmatmul.msk.f32.vlgmr.msra.gmra.mxu3 %vm806_vm8, %v765_v60 }
 0x220   : > { %v827_v0 = vpop.f32.mrf.mxu3 }
 0x221   : > { %v828_v3 = vadd.f32 %v827_v0, %v804_v63  ;;  %v1021_v63 = vld [vmem:[%s3959_s12 + $0x10] sm:$0xff]  ;;  %v1022_v0 = vld [vmem:[%s3959_s12 + $0x18] sm:$0xff] }
 0x223   : > { %v835_v4 = vadd.f32 %v833_v1, %v828_v3 }
 0x225   : > { %871 = vrot.lane.b32.xlu2 %v835_v4, %s3993_s25  ;;  %876 = vrot.lane.b32.xlu1 %v835_v4, %s2657_s20  ;;  %s3994_s20 = sld [smem:[#allocation13_spill]] }
 0x22d   : > { %867 = vrot.lane.b32.xlu1 %v835_v4, %s2658_s21  ;;  %s2929_s21 = scalar_lea.vmem %s3994_s20, %s2466_s23 }
 0x22e   : > { %v851_v21 = vld [vmem:[%s2929_s21 + $0x78] sm:$0xff]  ;;  %v850_v22 = vld [vmem:[%s2929_s21 + $0x70] sm:$0xff]  ;;  %v849_v24 = vld [vmem:[%s2929_s21 + $0x68] sm:$0xff] }
 0x22f   : > { %953 = vmatpush.msra.mxu0 %v851_v21  ;;  %v848_v25 = vld [vmem:[%s2929_s21 + $0x60] sm:$0xff]  ;;  %v847_v27 = vld [vmem:[%s2929_s21 + $0x58] sm:$0xff]  ;;  %v846_v29 = vld [vmem:[%s2929_s21 + $0x50] sm:$0xff] }
 0x230   : > { %v845_v31 = vld [vmem:[%s2929_s21 + $0x48] sm:$0xff]  ;;  %v844_v32 = vld [vmem:[%s2929_s21 + $0x40] sm:$0xff]  ;;  %v843_v33 = vld [vmem:[%s2929_s21 + $0x38] sm:$0xff] }
 0x231   : > { %954 = vmatpush.msra.mxu0 %v850_v22  ;;  %v842_v34 = vld [vmem:[%s2929_s21 + $0x30] sm:$0xff]  ;;  %v841_v36 = vld [vmem:[%s2929_s21 + $0x28] sm:$0xff]  ;;  %v840_v38 = vld [vmem:[%s2929_s21 + $0x20] sm:$0xff] }
 0x232   : > { %v839_v39 = vld [vmem:[%s2929_s21 + $0x18] sm:$0xff]  ;;  %v838_v40 = vld [vmem:[%s2929_s21 + $0x10] sm:$0xff]  ;;  %v837_v41 = vld [vmem:[%s2929_s21 + $0x8] sm:$0xff] }
 0x233   : > { %955 = vmatpush.msra.mxu0 %v849_v24  ;;  %v836_v43 = vld [vmem:[%s2929_s21] sm:$0xff]  ;;  %s2662_s21 = smov 120  }
 0x234   : > { %v1049_v21 = vld [vmem:[%s3962_s15 + $0xc0] sm:$0xff] }
 0x235   : > { %956 = vmatpush.msra.mxu0 %v848_v25  ;;  %v1081_v22 = vld [vmem:[%s3962_s15 + $0x1c0] sm:$0xff]  ;;  %v1047_v25 = vld [vmem:[%s3962_s15 + $0xb0] sm:$0xff] }
 0x237   : > { %957 = vmatpush.msra.mxu0 %v847_v27 }
 0x239   : > { %958 = vmatpush.msra.mxu0 %v846_v29 }
 0x23b   : > { %959 = vmatpush.msra.mxu0 %v845_v31  ;;  %v1088_v31 = vld [vmem:[%s3962_s15 + $0x1f8] sm:$0xff] }
 0x23d   : > { %960 = vmatpush.msra.mxu0 %v844_v32  ;;  %v1045_v32 = vld [vmem:[%s3962_s15 + $0xa0] sm:$0xff] }
 0x23f   : > { %961 = vmatpush.msra.mxu0 %v843_v33  ;;  %v1077_v33 = vld [vmem:[%s3962_s15 + $0x1a0] sm:$0xff] }
 0x241   : > { %962 = vmatpush.msra.mxu0 %v842_v34  ;;  %v1054_v34 = vld [vmem:[%s3962_s15 + $0xe8] sm:$0xff] }
 0x243   : > { %963 = vmatpush.msra.mxu0 %v841_v36  ;;  %v1043_v36 = vld [vmem:[%s3962_s15 + $0x90] sm:$0xff] }
 0x245   : > { %964 = vmatpush.msra.mxu0 %v840_v38  ;;  %v1052_v38 = vld [vmem:[%s3962_s15 + $0xd8] sm:$0xff] }
 0x247   : > { %965 = vmatpush.msra.mxu0 %v839_v39  ;;  %v1084_v39 = vld [vmem:[%s3962_s15 + $0x1d8] sm:$0xff] }
 0x249   : > { %966 = vmatpush.msra.mxu0 %v838_v40  ;;  %v1041_v40 = vld [vmem:[%s3962_s15 + $0x80] sm:$0xff] }
 0x24b   : > { %967 = vmatpush.msra.mxu0 %v837_v41  ;;  %v1073_v41 = vld [vmem:[%s3962_s15 + $0x180] sm:$0xff] }
 0x24d   : > { %968 = vmatpush.msra.mxu0 %v836_v43  ;;  %v1082_v43 = vld [vmem:[%s3962_s15 + $0x1c8] sm:$0xff] }
 0x24e   : > { %969 = vmatmul.f32.vlgmr.msra.gmra.mxu0 %v856_v44  ;;  %v1039_v44 = vld [vmem:[%s3962_s15 + $0x70] sm:$0xff] }
 0x27f   : > { %v872_v6 = vpop.permute.xlu2 %871 }
 0x280   : > { %v875_v9 = vsel %vm874_vm11, %v872_v6, 0.0 }
 0x297   : > { %v877_v7 = vpop.permute.xlu1 %876 }
 0x298   : > { %v880_v8 = vsel %vm879_vm9, %v877_v7, 0.0 }
 0x299   : > { %2424 = vmatpush.msk.msrb.mxu3 %vm2470_vm10, %v880_v8 }
 0x29b   : > { %2426 = vmatpush.msk.msrb.mxu3 %vm2470_vm10, %v875_v9 }
 0x29f   : > { %v868_v10 = vpop.permute.xlu1 %867 }
 0x2a0   : > { %2427 = vmatpush.msk.msrb.mxu3 %vm764_vm7, %v868_v10 }
 0x2a2   : > { %923 = vmatpush.msrb.mxu3 %v835_v4 }
 0x2a3   : > { %2428 = vmatmul.msk.f32.vlgmr.msrb.gmra.mxu3 %vm706_vm4, %v852_v11  ;;  %v1055_v11 = vld [vmem:[%s3962_s15 + $0xf0] sm:$0xff] }
 0x2a4   : > { %985 = vmatpush.msra.mxu3 %v865_v19  ;;  %v1051_v19 = vld [vmem:[%s3962_s15 + $0xd0] sm:$0xff] }
 0x2a6   : > { %986 = vmatpush.msra.mxu3 %v864_v20  ;;  %v1083_v20 = vld [vmem:[%s3962_s15 + $0x1d0] sm:$0xff] }
 0x2a8   : > { %987 = vmatpush.msra.mxu3 %v863_v23 }
 0x2aa   : > { %988 = vmatpush.msra.mxu3 %v862_v26  ;;  %v1079_v26 = vld [vmem:[%s3962_s15 + $0x1b0] sm:$0xff] }
 0x2ab   : > { %2429 = vmatmul.msk.f32.gmra.mxu3 %vm706_vm4, %v853_v12  ;;  %v1087_v12 = vld [vmem:[%s3962_s15 + $0x1f0] sm:$0xff] }
 0x2ac   : > { %989 = vmatpush.msra.mxu3 %v861_v28 }
 0x2ae   : > { %990 = vmatpush.msra.mxu3 %v860_v30  ;;  %v1056_v30 = vld [vmem:[%s3962_s15 + $0xf8] sm:$0xff] }
 0x2b0   : > { %991 = vmatpush.msra.mxu3 %v859_v35  ;;  %v1086_v35 = vld [vmem:[%s3962_s15 + $0x1e8] sm:$0xff] }
 0x2b2   : > { %992 = vmatpush.msra.mxu3 %v858_v37  ;;  %v1075_v37 = vld [vmem:[%s3962_s15 + $0x190] sm:$0xff] }
 0x2b3   : > { %2430 = vmatmul.msk.f32.gmra.mxu3 %vm706_vm4, %v854_v13 }
 0x2b4   : > { %1234 = vmatpush.msrb.mxu3 %v1087_v12  ;;  %v1066_v12 = vld [vmem:[%s3962_s15 + $0x148] sm:$0xff] }
 0x2bb   : > { %2431 = vmatmul.msk.f32.gmra.mxu3 %vm706_vm4, %v855_v14 }
 0x2cb   : > { %v970_v51 = vpop.f32.mrf.mxu0 }
 0x326   : > { %v2918_v15 = vpop.f32.mrf.mxu3 }
 0x32e   : > { %v928_v16 = vpop.f32.mrf.mxu3 }
 0x32f   : > { %938 = vrot.lane.b32.xlu2 %v928_v16, %s3974_s29  ;;  %s3004_s29 = scalar_lea.vmem %s3995_s3, %s2466_s23 }
 0x330   : > { %v1017_v1 = vld [vmem:[%s3004_s29 + $0x70] sm:$0xff]  ;;  %v1018_v3 = vld [vmem:[%s3004_s29 + $0x78] sm:$0xff]  ;;  %v1015_v4 = vld [vmem:[%s3004_s29 + $0x60] sm:$0xff] }
 0x331   : > { %1182 = vmatpush.msrb.mxu2 %v1017_v1  ;;  %1202 = vmatpush.msrb.mxu0 %v1018_v3  ;;  %v1016_v5 = vld [vmem:[%s3004_s29 + $0x68] sm:$0xff]  ;;  %v1013_v6 = vld [vmem:[%s3004_s29 + $0x50] sm:$0xff]  ;;  %v1014_v7 = vld [vmem:[%s3004_s29 + $0x58] sm:$0xff] }
 0x332   : > { %v1011_v8 = vld [vmem:[%s3004_s29 + $0x40] sm:$0xff]  ;;  %v1012_v9 = vld [vmem:[%s3004_s29 + $0x48] sm:$0xff]  ;;  %v1009_v13 = vld [vmem:[%s3004_s29 + $0x30] sm:$0xff] }
 0x333   : > { %1183 = vmatpush.msrb.mxu2 %v1015_v4  ;;  %1203 = vmatpush.msrb.mxu0 %v1016_v5  ;;  %v1010_v14 = vld [vmem:[%s3004_s29 + $0x38] sm:$0xff]  ;;  %v1007_v16 = vld [vmem:[%s3004_s29 + $0x20] sm:$0xff]  ;;  %v1005_v23 = vld [vmem:[%s3004_s29 + $0x10] sm:$0xff] }
 0x334   : > { %v1006_v24 = vld [vmem:[%s3004_s29 + $0x18] sm:$0xff]  ;;  %v1003_v27 = vld [vmem:[%s3004_s29] sm:$0xff]  ;;  %v1004_v28 = vld [vmem:[%s3004_s29 + $0x8] sm:$0xff] }
 0x335   : > { %1184 = vmatpush.msrb.mxu2 %v1013_v6  ;;  %1204 = vmatpush.msrb.mxu0 %v1014_v7  ;;  %v1031_v1 = vld [vmem:[%s3962_s15 + $0x30] sm:$0xff]  ;;  %v1038_v3 = vld [vmem:[%s3962_s15 + $0x68] sm:$0xff]  ;;  %v1029_v6 = vld [vmem:[%s3962_s15 + $0x20] sm:$0xff] }
 0x336   : > { %v931_v17 = vpop.f32.mrf.mxu3  ;;  %v1063_v4 = vld [vmem:[%s3962_s15 + $0x130] sm:$0xff]  ;;  %v1070_v5 = vld [vmem:[%s3962_s15 + $0x168] sm:$0xff]  ;;  %v1036_v7 = vld [vmem:[%s3962_s15 + $0x58] sm:$0xff] }
 0x337   : > { %942 = vrot.lane.b32.xlu0 %v931_v17, %s3976_s22  ;;  %999 = vperm.xlu2 %2579, %v857_v42   ;;  %v1085_v17 = vld [vmem:[%s3962_s15 + $0x1e0] sm:$0xff]  ;;  %v1050_v42 = vld [vmem:[%s3962_s15 + $0xc8] sm:$0xff]  ;;  %s609_s22 = sand.u32 1, %s2640_s28  }
 0x338   : > { %1185 = vmatpush.msrb.mxu2 %v1011_v8  ;;  %1205 = vmatpush.msrb.mxu0 %v1012_v9  ;;  %v1061_v8 = vld [vmem:[%s3962_s15 + $0x120] sm:$0xff]  ;;  %v1068_v9 = vld [vmem:[%s3962_s15 + $0x158] sm:$0xff]  ;;  %s2405_s20 = sshll.u32 %s609_s22, 9  ;;  %s2288_s0 = scalar_lea.sflag [#allocation4], %s609_s22 }
 0x339   : > { %1235 = vmatpush.msrb.mxu3 %v1085_v17  ;;  %v1027_v17 = vld [vmem:[%s3962_s15 + $0x10] sm:$0xff]  ;;  %s3761_s23 = scalar_lea.vmem [#allocation3], %s2405_s20 }
 0x33a   : > { %1186 = vmatpush.msrb.mxu2 %v1009_v13  ;;  %1206 = vmatpush.msrb.mxu0 %v1010_v14  ;;  %v1032_v13 = vld [vmem:[%s3962_s15 + $0x38] sm:$0xff] }
 0x33b   : > { %1236 = vmatpush.msrb.mxu3 %v1083_v20  ;;  %v1064_v14 = vld [vmem:[%s3962_s15 + $0x138] sm:$0xff] }
 0x33c   : > { %1187 = vmatpush.msrb.mxu2 %v1007_v16  ;;  %v1062_v16 = vld [vmem:[%s3962_s15 + $0x128] sm:$0xff]  ;;  %v1060_v20 = vld [vmem:[%s3962_s15 + $0x118] sm:$0xff] }
 0x33d   : > { %1237 = vmatpush.msrb.mxu3 %v1081_v22  ;;  %v1057_v22 = vld [vmem:[%s3962_s15 + $0x100] sm:$0xff] }
 0x33e   : > { %v934_v18 = vpop.f32.mrf.mxu3  ;;  %1188 = vmatpush.msrb.mxu2 %v1005_v23  ;;  %v1026_v23 = vld [vmem:[%s3962_s15 + $0x8] sm:$0xff] }
 0x33f   : > { %946 = vrot.lane.b32.xlu1 %v934_v18, %s2661_s27  ;;  %v1008_v18 = vld [vmem:[%s3004_s29 + $0x28] sm:$0xff]  ;;  %1238 = vmatpush.msrb.mxu3 %v1079_v26  ;;  %s2664_s29 = smov 64  }
 0x340   : > { %1207 = vmatpush.msrb.mxu0 %v1008_v18  ;;  %1189 = vmatpush.msrb.mxu2 %v1003_v27  ;;  %v1059_v18 = vld [vmem:[%s3962_s15 + $0x110] sm:$0xff] }
 0x341   : > { %1239 = vmatpush.msrb.mxu3 %v1077_v33 }
 0x342   : > { %1208 = vmatpush.msrb.mxu0 %v1006_v24  ;;  %1254 = vmatpush.msra.mxu2 %v1056_v30  ;;  %v1058_v24 = vld [vmem:[%s3962_s15 + $0x108] sm:$0xff] }
 0x343   : > { %1240 = vmatpush.msrb.mxu3 %v1075_v37 }
 0x344   : > { %1209 = vmatpush.msrb.mxu0 %v1004_v28  ;;  %1255 = vmatpush.msra.mxu2 %v1054_v34 }
 0x345   : > { %1241 = vmatpush.msrb.mxu3 %v1073_v41 }
 0x346   : > { %1274 = vmatpush.msra.mxu0 %v1088_v31  ;;  %1256 = vmatpush.msra.mxu2 %v1052_v38 }
 0x348   : > { %1275 = vmatpush.msra.mxu0 %v1086_v35  ;;  %1257 = vmatpush.msra.mxu2 %v1050_v42 }
 0x34a   : > { %1276 = vmatpush.msra.mxu0 %v1084_v39 }
 0x34c   : > { %1277 = vmatpush.msra.mxu0 %v1082_v43 }
 0x389   : > { %v939_v45 = vpop.permute.xlu2 %938 }
 0x38a   : > { %v949_v47 = vsel %vm806_vm8, %v2918_v15, %v939_v45  ;;  %v1053_v15 = vld [vmem:[%s3962_s15 + $0xe0] sm:$0xff]  ;;  %v1071_v45 = vld [vmem:[%s3962_s15 + $0x170] sm:$0xff] }
 0x38b   : > { %1242 = vmatpush.msrb.mxu3 %v1071_v45 }
 0x391   : > { %v1000_v53 = vpop.permute.xlu2 %999 }
 0x3a9   : > { %v943_v46 = vpop.permute.xlu0 %942 }
 0x3aa   : > { %v950_v48 = vsel %vm706_vm4, %v949_v47, %v943_v46  ;;  %v1048_v47 = vld [vmem:[%s3962_s15 + $0xb8] sm:$0xff] }
 0x3ab   : > { %1258 = vmatpush.msra.mxu2 %v1048_v47 }
 0x3b1   : > { %v947_v49 = vpop.permute.xlu1 %946 }
 0x3b2   : > { %v952_v50 = vsel %vm951_vm12, %v950_v48, %v947_v49  ;;  %v1080_v48 = vld [vmem:[%s3962_s15 + $0x1b8] sm:$0xff]  ;;  %v1037_v49 = vld [vmem:[%s3962_s15 + $0x60] sm:$0xff] }
 0x3b3   : > { %2432 = vmatmul.msk.f32.vlgmr.msra.gmra.mxu3 %vm973_vm13, %v952_v50  ;;  %v1069_v50 = vld [vmem:[%s3962_s15 + $0x160] sm:$0xff]  ;;  %1278 = vmatpush.msra.mxu0 %v1080_v48 }
 0x3b4   : > { %1243 = vmatpush.msrb.mxu3 %v1069_v50 }
 0x436   : > { %v994_v52 = vpop.f32.mrf.mxu3 }
 0x437   : > { %v995_v54 = vadd.f32 %v994_v52, %v970_v51  ;;  %v1046_v51 = vld [vmem:[%s3962_s15 + $0xa8] sm:$0xff] }
 0x438   : > { %v1078_v52 = vld [vmem:[%s3962_s15 + $0x1a8] sm:$0xff]  ;;  %1259 = vmatpush.msra.mxu2 %v1046_v51 }
 0x439   : > { %v1002_v55 = vadd.f32 %v1000_v53, %v995_v54  ;;  %v1035_v53 = vld [vmem:[%s3962_s15 + $0x50] sm:$0xff]  ;;  %1279 = vmatpush.msra.mxu0 %v1078_v52 }
 0x43a   : > { %v1067_v54 = vld [vmem:[%s3962_s15 + $0x150] sm:$0xff] }
 0x43b   : > { %1090 = vrot.lane.b32.xlu2 %v1002_v55, %s2662_s21  ;;  %1095 = vrot.lane.b32.xlu1 %v1002_v55, %s3993_s25  ;;  %s2666_s21 = smov 96  }
 0x43c   : > { %1100 = vrot.lane.b32.xlu0 %v1002_v55, %s2663_s4  ;;  %1244 = vmatpush.msrb.mxu3 %v1067_v54  ;;  %s2667_s4 = smov 112  }
 0x43d   : > { %1280 = vmatpush.msra.mxu0 %v1076_v56 }
 0x495   : > { %v1091_v61 = vpop.permute.xlu2 %1090 }
 0x4ad   : > { %v1096_v57 = vpop.permute.xlu1 %1095 }
 0x4ae   : > { %v1101_v58 = vpop.permute.xlu0 %1100  ;;  %v1099_v60 = vsel %vm1098_vm0, %v1096_v57, 0.0  ;;  %v1033_v57 = vld [vmem:[%s3962_s15 + $0x40] sm:$0xff] }
 0x4af   : > { %v1104_v59 = vsel %vm1103_vm14, %v1101_v58, 0.0  ;;  %v1065_v58 = vld [vmem:[%s3962_s15 + $0x140] sm:$0xff] }
 0x4b0   : > { %2434 = vmatpush.msk.msra.mxu1 %vm2471_vm15, %v1104_v59  ;;  %v1042_v59 = vld [vmem:[%s3962_s15 + $0x88] sm:$0xff]  ;;  %1245 = vmatpush.msrb.mxu3 %v1065_v58 }
 0x4b2   : > { %2436 = vmatpush.msk.msra.mxu1 %vm2471_vm15, %v1099_v60  ;;  %v1074_v60 = vld [vmem:[%s3962_s15 + $0x188] sm:$0xff]  ;;  %1246 = vmatpush.msrb.mxu3 %v1063_v4 }
 0x4b3   : > { %1281 = vmatpush.msra.mxu0 %v1074_v60 }
 0x4b4   : > { %2437 = vmatpush.msk.msra.mxu1 %vm1093_vm1, %v1091_v61  ;;  %v1023_v61 = vld [vmem:[%s3960_s13] sm:$0xff]  ;;  %1247 = vmatpush.msrb.mxu3 %v1061_v8 }
 0x4b5   : > { %2442 = vmatmul.msk.f32.vlgmr.msrb.gmra.mxu2 %vm973_vm13, %v1023_v61  ;;  %2443 = vmatmul.msk.f32.vlgmr.msrb.gmra.mxu0 %vm973_vm13, %v1023_v61 }
 0x4b6   : > { %1147 = vmatpush.msra.mxu1 %v1002_v55  ;;  %v1044_v55 = vld [vmem:[%s3962_s15 + $0x98] sm:$0xff]  ;;  %1248 = vmatpush.msrb.mxu3 %v1059_v18 }
 0x4b7   : > { %2438 = vmatmul.msk.f32.vlgmr.msra.gmra.mxu1 %vm706_vm4, %v1019_v62  ;;  %1260 = vmatpush.msra.mxu2 %v1044_v55 }
 0x4b8   : > { %1214 = vmatpush.msrb.mxu1 %v1055_v11  ;;  %v1034_v11 = vld [vmem:[%s3962_s15 + $0x48] sm:$0xff]  ;;  %1249 = vmatpush.msrb.mxu3 %v1057_v22 }
 0x4b9   : > { %1261 = vmatpush.msra.mxu2 %v1042_v59 }
 0x4ba   : > { %1215 = vmatpush.msrb.mxu1 %v1053_v15  ;;  %v1030_v15 = vld [vmem:[%s3962_s15 + $0x28] sm:$0xff] }
 0x4bc   : > { %1216 = vmatpush.msrb.mxu1 %v1051_v19  ;;  %v1028_v19 = vld [vmem:[%s3962_s15 + $0x18] sm:$0xff] }
 0x4be   : > { %1217 = vmatpush.msrb.mxu1 %v1049_v21  ;;  %v1025_v21 = vld [vmem:[%s3962_s15] sm:$0xff] }
 0x4bf   : > { %2439 = vmatmul.msk.f32.gmra.mxu1 %vm706_vm4, %v1020_v2  ;;  %v1040_v2 = vld [vmem:[%s3962_s15 + $0x78] sm:$0xff] }
 0x4c0   : > { %1218 = vmatpush.msrb.mxu1 %v1047_v25  ;;  %1262 = vmatpush.msra.mxu2 %v1040_v2  ;;  %v1024_v25 = vld [vmem:[%s3961_s14] sm:$0xff] }
 0x4c1   : > { %1296 = vperm.xlu1 %2585, %v1024_v25  }
 0x4c2   : > { %1219 = vmatpush.msrb.mxu1 %v1045_v32  ;;  %1263 = vmatpush.msra.mxu2 %v1038_v3 }
 0x4c4   : > { %1220 = vmatpush.msrb.mxu1 %v1043_v36  ;;  %1264 = vmatpush.msra.mxu2 %v1036_v7 }
 0x4c6   : > { %1221 = vmatpush.msrb.mxu1 %v1041_v40  ;;  %1265 = vmatpush.msra.mxu2 %v1034_v11 }
 0x4c7   : > { %2440 = vmatmul.msk.f32.gmra.mxu1 %vm706_vm4, %v1021_v63 }
 0x4c8   : > { %1222 = vmatpush.msrb.mxu1 %v1039_v44  ;;  %1266 = vmatpush.msra.mxu2 %v1032_v13 }
 0x4ca   : > { %1223 = vmatpush.msrb.mxu1 %v1037_v49  ;;  %1267 = vmatpush.msra.mxu2 %v1030_v15 }
 0x4cc   : > { %1224 = vmatpush.msrb.mxu1 %v1035_v53  ;;  %1268 = vmatpush.msra.mxu2 %v1028_v19 }
 0x4ce   : > { %1225 = vmatpush.msrb.mxu1 %v1033_v57  ;;  %1269 = vmatpush.msra.mxu2 %v1026_v23 }
 0x4cf   : > { %2441 = vmatmul.msk.f32.gmra.mxu1 %vm706_vm4, %v1022_v0  ;;  %v1072_v0 = vld [vmem:[%s3962_s15 + $0x178] sm:$0xff] }
 0x4d0   : > { %1282 = vmatpush.msra.mxu0 %v1072_v0  ;;  %1226 = vmatpush.msrb.mxu1 %v1031_v1 }
 0x4d2   : > { %1283 = vmatpush.msra.mxu0 %v1070_v5  ;;  %1227 = vmatpush.msrb.mxu1 %v1029_v6 }
 0x4d4   : > { %1284 = vmatpush.msra.mxu0 %v1068_v9  ;;  %1228 = vmatpush.msrb.mxu1 %v1027_v17 }
 0x4d6   : > { %1285 = vmatpush.msra.mxu0 %v1066_v12  ;;  %1229 = vmatpush.msrb.mxu1 %v1025_v21 }
 0x4d8   : > { %1286 = vmatpush.msra.mxu0 %v1064_v14 }
 0x4da   : > { %1287 = vmatpush.msra.mxu0 %v1062_v16 }
 0x4dc   : > { %1288 = vmatpush.msra.mxu0 %v1060_v20 }
 0x4de   : > { %1289 = vmatpush.msra.mxu0 %v1058_v24 }
 0x532   : > { %v1211_v32 = vpop.f32.mrf.mxu0 }
 0x533   : > { %v1297_v36 = vpop.permute.xlu1 %1296 }
 0x534   : > { %v3014_v10 = vpop.f32.mrf.mxu1 }
 0x538   : > { %v1191_v31 = vpop.f32.mrf.mxu2 }
 0x53c   : > { %v3054_v29 = vpop.f32.mrf.mxu1 }
 0x544   : > { %v3104_v46 = vpop.f32.mrf.mxu1 }
 0x54c   : > { %v1158_v62 = vpop.f32.mrf.mxu1 }
 0x54d   : > { %v2580_v63 = vpack.i.bf16 %v3054_v29, %v1158_v62 }
 0x54f   : > { %2581 = vrot.lane.b32.xlu0 %v2580_v63, %s2664_s29 }
 0x5c1   : > { %v2582_v26 = vpop.permute.xlu0 %2581 }
 0x5c2   : > { %v2584_v27 = vunpack.i.h.bf16 %v2582_v26  ;;  %v2583_v28 = vunpack.i.l.bf16 %v2582_v26 }
 0x5c4   : > { %v1169_v29 = vsel %vm973_vm13, %v3014_v10, %v2584_v27  ;;  %v1170_v30 = vsel %vm973_vm13, %v3104_v46, %v2583_v28 }
 0x5c5   : > { %1230 = vmatmul.f32.vlgmr.msrb.gmra.mxu1 %v1169_v29  ;;  %1250 = vmatmul.f32.vlgmr.msrb.gmra.mxu3 %v1170_v30 }
 0x5c6   : > { %1270 = vmatmul.f32.vlgmr.msra.gmra.mxu2 %v1169_v29  ;;  %1290 = vmatmul.f32.vlgmr.msra.gmra.mxu0 %v1170_v30 }
 0x642   : > { %v1231_v33 = vpop.f32.mrf.mxu1 }
 0x643   : > { %v1232_v34 = vadd.f32 %v1231_v33, %v1191_v31  ;;  %v1291_v40 = vpop.f32.mrf.mxu0 }
 0x648   : > { %v1251_v35 = vpop.f32.mrf.mxu3 }
 0x649   : > { %v1252_v37 = vadd.f32 %v1251_v35, %v1232_v34  ;;  %v1271_v38 = vpop.f32.mrf.mxu2 }
 0x64a   : > { %v1272_v39 = vadd.f32 %v1271_v38, %v1211_v32 }
 0x64b   : > { %v3234_v41 = vadd.f32 %v1297_v36, %v1252_v37 }
 0x64c   : > { %v1292_v10 = vadd.f32 %v1291_v40, %v1272_v39 }
 0x64d   : > { %1317 = vst.msk [vmem:[#allocation2] sm:$0x1] %vm1316_vm2, %v3234_v41  ;;  %v1302_v42 = vrot.slane %v3234_v41, 1  ;;  %v1303_v43 = vrot.slane %v3234_v41, 2  ;;  %v1304_v53 = vrot.slane %v3234_v41, 3  ;;  %v1305_v54 = vrot.slane %v3234_v41, 4 }
 0x64e   : > { %v3240_v44 = vadd.f32 %v1297_v36, %v1292_v10  ;;  %v1306_v55 = vrot.slane %v3234_v41, 5  ;;  %v1307_v56 = vrot.slane %v3234_v41, 6  ;;  %v1308_v57 = vrot.slane %v3234_v41, 7 }
 0x64f   : > { %1318 = vst.msk [vmem:[#allocation2 + $0x10] sm:$0x1] %vm1316_vm2, %v1302_v42  ;;  %v1325_v14 = vperm.slane %v3234_v41, 0  ;;  %v1326_v21 = vperm.slane %v1302_v42, 0  ;;  %v1327_v31 = vperm.slane %v1303_v43, 0  ;;  %v1328_v38 = vperm.slane %v1304_v53, 0 }
 0x650   : > { %v1580_v45 = vperm.slane %v3240_v44, 0  ;;  %v1558_v46 = vrot.slane %v3240_v44, 1  ;;  %1572 = vst.msk [vmem:[#allocation2 + $0x8] sm:$0x1] %vm1316_vm2, %v3240_v44  ;;  %v1559_v47 = vrot.slane %v3240_v44, 2  ;;  %v1560_v48 = vrot.slane %v3240_v44, 3 }
 0x651   : > { %v1561_v49 = vrot.slane %v3240_v44, 4  ;;  %1319 = vst.msk [vmem:[#allocation2 + $0x20] sm:$0x1] %vm1316_vm2, %v1303_v43  ;;  %v1562_v50 = vrot.slane %v3240_v44, 5  ;;  %v1563_v51 = vrot.slane %v3240_v44, 6  ;;  %v1564_v52 = vrot.slane %v3240_v44, 7 }
 0x652   : > { %1652 = vrot.lane.b32.xlu2 %v1580_v45, %s2665_s19  ;;  %1620 = vrot.lane.b32.xlu1 %v1580_v45, %s2666_s21  ;;  %1573 = vst.msk [vmem:[#allocation2 + $0x18] sm:$0x1] %vm1316_vm2, %v1558_v46  ;;  %v1581_v58 = vperm.slane %v1558_v46, 0  ;;  %v1582_v59 = vperm.slane %v1559_v47, 0  ;;  %v1583_v60 = vperm.slane %v1560_v48, 0 }
 0x653   : > { %1588 = vrot.lane.b32.xlu0 %v1580_v45, %s2667_s4  ;;  %1574 = vst.msk [vmem:[#allocation2 + $0x28] sm:$0x1] %vm1316_vm2, %v1559_v47  ;;  %v1584_v61 = vperm.slane %v1561_v49, 0  ;;  %v1585_v62 = vperm.slane %v1562_v50, 0  ;;  %v1586_v1 = vperm.slane %v1563_v51, 0  ;;  %v3350_v9 = vperm.slane %v1564_v52, 0 }
 0x654   : > { %1575 = vst.msk [vmem:[#allocation2 + $0x38] sm:$0x1] %vm1316_vm2, %v1560_v48 }
 0x655   : > { %1576 = vst.msk [vmem:[#allocation2 + $0x48] sm:$0x1] %vm1316_vm2, %v1561_v49 }
 0x656   : > { %1577 = vst.msk [vmem:[#allocation2 + $0x58] sm:$0x1] %vm1316_vm2, %v1562_v50 }
 0x657   : > { %1578 = vst.msk [vmem:[#allocation2 + $0x68] sm:$0x1] %vm1316_vm2, %v1563_v51 }
 0x658   : > { %1579 = vst.msk [vmem:[#allocation2 + $0x78] sm:$0x1] %vm1316_vm2, %v1564_v52 }
 0x659   : > { %1320 = vst.msk [vmem:[#allocation2 + $0x30] sm:$0x1] %vm1316_vm2, %v1304_v53 }
 0x65a   : > { %1748 = vrot.lane.b32.xlu2 %v1580_v45, %s3996_s1  ;;  %1716 = vrot.lane.b32.xlu1 %v1580_v45, %s2661_s27  ;;  %1321 = vst.msk [vmem:[#allocation2 + $0x40] sm:$0x1] %vm1316_vm2, %v1305_v54 }
 0x65b   : > { %1684 = vrot.lane.b32.xlu0 %v1580_v45, %s2664_s29  ;;  %1322 = vst.msk [vmem:[#allocation2 + $0x50] sm:$0x1] %vm1316_vm2, %v1306_v55 }
 0x65c   : > { %1323 = vst.msk [vmem:[#allocation2 + $0x60] sm:$0x1] %vm1316_vm2, %v1307_v56 }
 0x65d   : > { %1324 = vst.msk [vmem:[#allocation2 + $0x70] sm:$0x1] %vm1316_vm2, %v1308_v57 }
 0x662   : > { %1654 = vrot.lane.b32.xlu1 %v1581_v58, %s2665_s19  ;;  %1590 = vrot.lane.b32.xlu2 %v1581_v58, %s2667_s4 }
 0x663   : > { %1780 = vrot.lane.b32.xlu0 %v1580_v45, %s3997_s24  ;;  %v1329_v45 = vperm.slane %v1305_v54, 0 }
 0x66a   : > { %1750 = vrot.lane.b32.xlu1 %v1581_v58, %s3996_s1  ;;  %1686 = vrot.lane.b32.xlu2 %v1581_v58, %s2664_s29 }
 0x66b   : > { %1622 = vrot.lane.b32.xlu0 %v1581_v58, %s2666_s21 }
 0x672   : > { %1592 = vrot.lane.b32.xlu1 %v1582_v59, %s2667_s4  ;;  %1782 = vrot.lane.b32.xlu2 %v1581_v58, %s3997_s24 }
 0x673   : > { %1718 = vrot.lane.b32.xlu0 %v1581_v58, %s2661_s27  ;;  %v1330_v58 = vperm.slane %v1306_v55, 0  ;;  %v1835_v55 = vld [vmem:[%s3963_s16] sm:$0xff] }
 0x67a   : > { %1688 = vrot.lane.b32.xlu1 %v1582_v59, %s2664_s29  ;;  %1624 = vrot.lane.b32.xlu2 %v1582_v59, %s2666_s21 }
 0x67b   : > { %1656 = vrot.lane.b32.xlu0 %v1582_v59, %s2665_s19 }
 0x682   : > { %1784 = vrot.lane.b32.xlu1 %v1582_v59, %s3997_s24  ;;  %1720 = vrot.lane.b32.xlu2 %v1582_v59, %s2661_s27 }
 0x683   : > { %1752 = vrot.lane.b32.xlu0 %v1582_v59, %s3996_s1 }
 0x68a   : > { %1626 = vrot.lane.b32.xlu1 %v1583_v60, %s2666_s21  ;;  %1658 = vrot.lane.b32.xlu2 %v1583_v60, %s2665_s19 }
 0x68b   : > { %1594 = vrot.lane.b32.xlu0 %v1583_v60, %s2667_s4 }
 0x692   : > { %1722 = vrot.lane.b32.xlu1 %v1583_v60, %s2661_s27  ;;  %1754 = vrot.lane.b32.xlu2 %v1583_v60, %s3996_s1 }
 0x693   : > { %1690 = vrot.lane.b32.xlu0 %v1583_v60, %s2664_s29 }
 0x69a   : > { %1660 = vrot.lane.b32.xlu1 %v1584_v61, %s2665_s19  ;;  %1596 = vrot.lane.b32.xlu2 %v1584_v61, %s2667_s4 }
 0x69b   : > { %1786 = vrot.lane.b32.xlu0 %v1583_v60, %s3997_s24 }
 0x6a2   : > { %1756 = vrot.lane.b32.xlu1 %v1584_v61, %s3996_s1  ;;  %1692 = vrot.lane.b32.xlu2 %v1584_v61, %s2664_s29 }
 0x6a3   : > { %1628 = vrot.lane.b32.xlu0 %v1584_v61, %s2666_s21 }
 0x6aa   : > { %1598 = vrot.lane.b32.xlu1 %v1585_v62, %s2667_s4  ;;  %1788 = vrot.lane.b32.xlu2 %v1584_v61, %s3997_s24 }
 0x6ab   : > { %1724 = vrot.lane.b32.xlu0 %v1584_v61, %s2661_s27 }
 0x6ac   : > { %v1653_v2 = vpop.permute.xlu2 %1652 }
 0x6ad   : > { %1676 = vst.msk [vmem:[#allocation2 + $0xb] sm:$0x1] %vm1316_vm2, %v1653_v2 }
 0x6b2   : > { %1694 = vrot.lane.b32.xlu1 %v1585_v62, %s2664_s29  ;;  %1630 = vrot.lane.b32.xlu2 %v1585_v62, %s2666_s21 }
 0x6b3   : > { %1662 = vrot.lane.b32.xlu0 %v1585_v62, %s2665_s19 }
 0x6b4   : > { %v1749_v63 = vpop.permute.xlu2 %1748 }
 0x6b5   : > { %1772 = vst.msk [vmem:[#allocation2 + $0xe] sm:$0x1] %vm1316_vm2, %v1749_v63 }
 0x6ba   : > { %1790 = vrot.lane.b32.xlu1 %v1585_v62, %s3997_s24  ;;  %1726 = vrot.lane.b32.xlu2 %v1585_v62, %s2661_s27 }
 0x6bb   : > { %1758 = vrot.lane.b32.xlu0 %v1585_v62, %s3996_s1  ;;  %v1836_v62 = vld [vmem:[%s3963_s16 + $0x8] sm:$0xff] }
 0x6bc   : > { %v1591_v0 = vpop.permute.xlu2 %1590  ;;  %1899 = vmatpush.msra.mxu1 %v1836_v62 }
 0x6bd   : > { %1613 = vst.msk [vmem:[#allocation2 + $0x19] sm:$0x1] %vm1316_vm2, %v1591_v0 }
 0x6be   : > { %1900 = vmatpush.msra.mxu1 %v1835_v55 }
 0x6c2   : > { %1632 = vrot.lane.b32.xlu1 %v1586_v1, %s2666_s21  ;;  %1664 = vrot.lane.b32.xlu2 %v1586_v1, %s2665_s19 }
 0x6c3   : > { %1600 = vrot.lane.b32.xlu0 %v1586_v1, %s2667_s4 }
 0x6c4   : > { %v1621_v3 = vpop.permute.xlu1 %1620  ;;  %v1687_v4 = vpop.permute.xlu2 %1686 }
 0x6c5   : > { %1644 = vst.msk [vmem:[#allocation2 + $0xa] sm:$0x1] %vm1316_vm2, %v1621_v3  ;;  %v1589_v5 = vpop.permute.xlu0 %1588 }
 0x6c6   : > { %1612 = vst.msk [vmem:[#allocation2 + $0x9] sm:$0x1] %vm1316_vm2, %v1589_v5 }
 0x6c7   : > { %1709 = vst.msk [vmem:[#allocation2 + $0x1c] sm:$0x1] %vm1316_vm2, %v1687_v4 }
 0x6ca   : > { %1728 = vrot.lane.b32.xlu1 %v1586_v1, %s2661_s27  ;;  %1760 = vrot.lane.b32.xlu2 %v1586_v1, %s3996_s1 }
 0x6cb   : > { %1696 = vrot.lane.b32.xlu0 %v1586_v1, %s2664_s29 }
 0x6cc   : > { %v1717_v6 = vpop.permute.xlu1 %1716  ;;  %v1783_v7 = vpop.permute.xlu2 %1782 }
 0x6cd   : > { %1740 = vst.msk [vmem:[#allocation2 + $0xd] sm:$0x1] %vm1316_vm2, %v1717_v6  ;;  %v1685_v8 = vpop.permute.xlu0 %1684 }
 0x6ce   : > { %1708 = vst.msk [vmem:[#allocation2 + $0xc] sm:$0x1] %vm1316_vm2, %v1685_v8  ;;  %v1332_v8 = vperm.slane %v1308_v57, 0 }
 0x6cf   : > { %1805 = vst.msk [vmem:[#allocation2 + $0x1f] sm:$0x1] %vm1316_vm2, %v1783_v7 }
 0x6d2   : > { %1666 = vrot.lane.b32.xlu1 %v3350_v9, %s2665_s19  ;;  %1602 = vrot.lane.b32.xlu2 %v3350_v9, %s2667_s4 }
 0x6d3   : > { %1792 = vrot.lane.b32.xlu0 %v1586_v1, %s3997_s24  ;;  %v1331_v1 = vperm.slane %v1307_v56, 0 }
 0x6d4   : > { %v1655_v11 = vpop.permute.xlu1 %1654  ;;  %v1625_v12 = vpop.permute.xlu2 %1624 }
 0x6d5   : > { %v1781_v13 = vpop.permute.xlu0 %1780  ;;  %1677 = vst.msk [vmem:[#allocation2 + $0x1b] sm:$0x1] %vm1316_vm2, %v1655_v11 }
 0x6d6   : > { %1804 = vst.msk [vmem:[#allocation2 + $0xf] sm:$0x1] %vm1316_vm2, %v1781_v13 }
 0x6d7   : > { %1646 = vst.msk [vmem:[#allocation2 + $0x2a] sm:$0x1] %vm1316_vm2, %v1625_v12 }
 0x6da   : > { %1698 = vrot.lane.b32.xlu2 %v3350_v9, %s2664_s29  ;;  %1397 = vrot.lane.b32.xlu1 %v1325_v14, %s2665_s19 }
 0x6db   : > { %1634 = vrot.lane.b32.xlu0 %v3350_v9, %s2666_s21 }
 0x6dc   : > { %v1751_v15 = vpop.permute.xlu1 %1750  ;;  %v1721_v16 = vpop.permute.xlu2 %1720 }
 0x6dd   : > { %1773 = vst.msk [vmem:[#allocation2 + $0x1e] sm:$0x1] %vm1316_vm2, %v1751_v15  ;;  %v1623_v17 = vpop.permute.xlu0 %1622 }
 0x6de   : > { %1645 = vst.msk [vmem:[#allocation2 + $0x1a] sm:$0x1] %vm1316_vm2, %v1623_v17 }
 0x6df   : > { %1742 = vst.msk [vmem:[#allocation2 + $0x2d] sm:$0x1] %vm1316_vm2, %v1721_v16 }
 0x6e2   : > { %1493 = vrot.lane.b32.xlu1 %v1325_v14, %s3996_s1  ;;  %1333 = vrot.lane.b32.xlu2 %v1325_v14, %s2667_s4 }
 0x6e3   : > { %1365 = vrot.lane.b32.xlu0 %v1325_v14, %s2666_s21 }
 0x6e4   : > { %v1593_v18 = vpop.permute.xlu1 %1592  ;;  %v1659_v19 = vpop.permute.xlu2 %1658 }
 0x6e5   : > { %1614 = vst.msk [vmem:[#allocation2 + $0x29] sm:$0x1] %vm1316_vm2, %v1593_v18  ;;  %v1719_v20 = vpop.permute.xlu0 %1718 }
 0x6e6   : > { %1741 = vst.msk [vmem:[#allocation2 + $0x1d] sm:$0x1] %vm1316_vm2, %v1719_v20 }
 0x6e7   : > { %1679 = vst.msk [vmem:[#allocation2 + $0x3b] sm:$0x1] %vm1316_vm2, %v1659_v19  ;;  %v1813_v19 = vld [vmem:[#allocation2 + $0x8] sm:$0xff] }
 0x6ea   : > { %1429 = vrot.lane.b32.xlu2 %v1325_v14, %s2664_s29  ;;  %1335 = vrot.lane.b32.xlu1 %v1326_v21, %s2667_s4 }
 0x6eb   : > { %1461 = vrot.lane.b32.xlu0 %v1325_v14, %s2661_s27 }
 0x6ec   : > { %v1689_v22 = vpop.permute.xlu1 %1688  ;;  %v1755_v23 = vpop.permute.xlu2 %1754 }
 0x6ed   : > { %1710 = vst.msk [vmem:[#allocation2 + $0x2c] sm:$0x1] %vm1316_vm2, %v1689_v22  ;;  %v1657_v24 = vpop.permute.xlu0 %1656 }
 0x6ee   : > { %1678 = vst.msk [vmem:[#allocation2 + $0x2b] sm:$0x1] %vm1316_vm2, %v1657_v24 }
 0x6ef   : > { %1775 = vst.msk [vmem:[#allocation2 + $0x3e] sm:$0x1] %vm1316_vm2, %v1755_v23 }
 0x6f2   : > { %1525 = vrot.lane.b32.xlu2 %v1325_v14, %s3997_s24  ;;  %1431 = vrot.lane.b32.xlu1 %v1326_v21, %s2664_s29 }
 0x6f3   : > { %1399 = vrot.lane.b32.xlu0 %v1326_v21, %s2665_s19 }
 0x6f4   : > { %v1785_v25 = vpop.permute.xlu1 %1784  ;;  %v1597_v26 = vpop.permute.xlu2 %1596 }
 0x6f5   : > { %1806 = vst.msk [vmem:[#allocation2 + $0x2f] sm:$0x1] %vm1316_vm2, %v1785_v25  ;;  %v1753_v27 = vpop.permute.xlu0 %1752 }
 0x6f6   : > { %1774 = vst.msk [vmem:[#allocation2 + $0x2e] sm:$0x1] %vm1316_vm2, %v1753_v27  ;;  %v1816_v27 = vld [vmem:[#allocation2 + $0x18] sm:$0xff] }
 0x6f7   : > { %1616 = vst.msk [vmem:[#allocation2 + $0x49] sm:$0x1] %vm1316_vm2, %v1597_v26 }
 0x6fa   : > { %1367 = vrot.lane.b32.xlu2 %v1326_v21, %s2666_s21  ;;  %1527 = vrot.lane.b32.xlu1 %v1326_v21, %s3997_s24 }
 0x6fb   : > { %1495 = vrot.lane.b32.xlu0 %v1326_v21, %s3996_s1 }
 0x6fc   : > { %v1627_v28 = vpop.permute.xlu1 %1626  ;;  %v1693_v29 = vpop.permute.xlu2 %1692 }
 0x6fd   : > { %1647 = vst.msk [vmem:[#allocation2 + $0x3a] sm:$0x1] %vm1316_vm2, %v1627_v28  ;;  %v1595_v30 = vpop.permute.xlu0 %1594 }
 0x6fe   : > { %1615 = vst.msk [vmem:[#allocation2 + $0x39] sm:$0x1] %vm1316_vm2, %v1595_v30 }
 0x6ff   : > { %1712 = vst.msk [vmem:[#allocation2 + $0x4c] sm:$0x1] %vm1316_vm2, %v1693_v29 }
 0x702   : > { %1463 = vrot.lane.b32.xlu2 %v1326_v21, %s2661_s27  ;;  %1369 = vrot.lane.b32.xlu1 %v1327_v31, %s2666_s21 }
 0x703   : > { %1337 = vrot.lane.b32.xlu0 %v1327_v31, %s2667_s4 }
 0x704   : > { %v1723_v32 = vpop.permute.xlu1 %1722  ;;  %v1789_v33 = vpop.permute.xlu2 %1788 }
 0x705   : > { %1743 = vst.msk [vmem:[#allocation2 + $0x3d] sm:$0x1] %vm1316_vm2, %v1723_v32  ;;  %v1691_v34 = vpop.permute.xlu0 %1690 }
 0x706   : > { %1711 = vst.msk [vmem:[#allocation2 + $0x3c] sm:$0x1] %vm1316_vm2, %v1691_v34 }
 0x707   : > { %1808 = vst.msk [vmem:[#allocation2 + $0x4f] sm:$0x1] %vm1316_vm2, %v1789_v33 }
 0x70a   : > { %1401 = vrot.lane.b32.xlu2 %v1327_v31, %s2665_s19  ;;  %1465 = vrot.lane.b32.xlu1 %v1327_v31, %s2661_s27 }
 0x70b   : > { %1433 = vrot.lane.b32.xlu0 %v1327_v31, %s2664_s29 }
 0x70c   : > { %v1661_v35 = vpop.permute.xlu1 %1660  ;;  %v1631_v36 = vpop.permute.xlu2 %1630 }
 0x70d   : > { %1680 = vst.msk [vmem:[#allocation2 + $0x4b] sm:$0x1] %vm1316_vm2, %v1661_v35  ;;  %v1787_v37 = vpop.permute.xlu0 %1786 }
 0x70e   : > { %1807 = vst.msk [vmem:[#allocation2 + $0x3f] sm:$0x1] %vm1316_vm2, %v1787_v37  ;;  %v1819_v37 = vld [vmem:[#allocation2 + $0x28] sm:$0xff] }
 0x70f   : > { %1649 = vst.msk [vmem:[#allocation2 + $0x5a] sm:$0x1] %vm1316_vm2, %v1631_v36 }
 0x712   : > { %1497 = vrot.lane.b32.xlu2 %v1327_v31, %s3996_s1  ;;  %1403 = vrot.lane.b32.xlu1 %v1328_v38, %s2665_s19 }
 0x713   : > { %1529 = vrot.lane.b32.xlu0 %v1327_v31, %s3997_s24 }
 0x714   : > { %v1757_v39 = vpop.permute.xlu1 %1756  ;;  %v1727_v40 = vpop.permute.xlu2 %1726 }
 0x715   : > { %1776 = vst.msk [vmem:[#allocation2 + $0x4e] sm:$0x1] %vm1316_vm2, %v1757_v39  ;;  %v1629_v10 = vpop.permute.xlu0 %1628 }
 0x716   : > { %1648 = vst.msk [vmem:[#allocation2 + $0x4a] sm:$0x1] %vm1316_vm2, %v1629_v10 }
 0x717   : > { %1745 = vst.msk [vmem:[#allocation2 + $0x5d] sm:$0x1] %vm1316_vm2, %v1727_v40 }
 0x71a   : > { %1339 = vrot.lane.b32.xlu2 %v1328_v38, %s2667_s4  ;;  %1499 = vrot.lane.b32.xlu1 %v1328_v38, %s3996_s1 }
 0x71b   : > { %1371 = vrot.lane.b32.xlu0 %v1328_v38, %s2666_s21 }
 0x71c   : > { %v1599_v42 = vpop.permute.xlu1 %1598  ;;  %v1665_v43 = vpop.permute.xlu2 %1664 }
 0x71d   : > { %1617 = vst.msk [vmem:[#allocation2 + $0x59] sm:$0x1] %vm1316_vm2, %v1599_v42  ;;  %v1725_v44 = vpop.permute.xlu0 %1724 }
 0x71e   : > { %1744 = vst.msk [vmem:[#allocation2 + $0x4d] sm:$0x1] %vm1316_vm2, %v1725_v44 }
 0x71f   : > { %1682 = vst.msk [vmem:[#allocation2 + $0x6b] sm:$0x1] %vm1316_vm2, %v1665_v43 }
 0x722   : > { %1435 = vrot.lane.b32.xlu2 %v1328_v38, %s2664_s29  ;;  %1341 = vrot.lane.b32.xlu1 %v1329_v45, %s2667_s4 }
 0x723   : > { %1467 = vrot.lane.b32.xlu0 %v1328_v38, %s2661_s27 }
 0x724   : > { %v1695_v46 = vpop.permute.xlu1 %1694  ;;  %v1761_v47 = vpop.permute.xlu2 %1760 }
 0x725   : > { %1713 = vst.msk [vmem:[#allocation2 + $0x5c] sm:$0x1] %vm1316_vm2, %v1695_v46  ;;  %v1663_v48 = vpop.permute.xlu0 %1662 }
 0x726   : > { %1681 = vst.msk [vmem:[#allocation2 + $0x5b] sm:$0x1] %vm1316_vm2, %v1663_v48 }
 0x727   : > { %1778 = vst.msk [vmem:[#allocation2 + $0x6e] sm:$0x1] %vm1316_vm2, %v1761_v47 }
 0x72a   : > { %1531 = vrot.lane.b32.xlu2 %v1328_v38, %s3997_s24  ;;  %1437 = vrot.lane.b32.xlu1 %v1329_v45, %s2664_s29 }
 0x72b   : > { %1405 = vrot.lane.b32.xlu0 %v1329_v45, %s2665_s19 }
 0x72c   : > { %v1791_v49 = vpop.permute.xlu1 %1790  ;;  %v1603_v50 = vpop.permute.xlu2 %1602 }
 0x72d   : > { %1809 = vst.msk [vmem:[#allocation2 + $0x5f] sm:$0x1] %vm1316_vm2, %v1791_v49  ;;  %v1759_v51 = vpop.permute.xlu0 %1758 }
 0x72e   : > { %1777 = vst.msk [vmem:[#allocation2 + $0x5e] sm:$0x1] %vm1316_vm2, %v1759_v51 }
 0x72f   : > { %1619 = vst.msk [vmem:[#allocation2 + $0x79] sm:$0x1] %vm1316_vm2, %v1603_v50 }
 0x732   : > { %1373 = vrot.lane.b32.xlu2 %v1329_v45, %s2666_s21  ;;  %1533 = vrot.lane.b32.xlu1 %v1329_v45, %s3997_s24 }
 0x733   : > { %1501 = vrot.lane.b32.xlu0 %v1329_v45, %s3996_s1 }
 0x734   : > { %v1633_v52 = vpop.permute.xlu1 %1632  ;;  %v1699_v53 = vpop.permute.xlu2 %1698 }
 0x735   : > { %1650 = vst.msk [vmem:[#allocation2 + $0x6a] sm:$0x1] %vm1316_vm2, %v1633_v52  ;;  %v1601_v54 = vpop.permute.xlu0 %1600 }
 0x736   : > { %1618 = vst.msk [vmem:[#allocation2 + $0x69] sm:$0x1] %vm1316_vm2, %v1601_v54 }
 0x737   : > { %1715 = vst.msk [vmem:[#allocation2 + $0x7c] sm:$0x1] %vm1316_vm2, %v1699_v53  ;;  %v1825_v53 = vld [vmem:[#allocation2 + $0x48] sm:$0xff] }
 0x73a   : > { %1469 = vrot.lane.b32.xlu2 %v1329_v45, %s2661_s27  ;;  %1375 = vrot.lane.b32.xlu1 %v1330_v58, %s2666_s21  ;;  %v1822_v45 = vld [vmem:[#allocation2 + $0x38] sm:$0xff] }
 0x73b   : > { %1343 = vrot.lane.b32.xlu0 %v1330_v58, %s2667_s4 }
 0x73c   : > { %v1729_v59 = vpop.permute.xlu1 %1728  ;;  %v1334_v60 = vpop.permute.xlu2 %1333 }
 0x73d   : > { %1746 = vst.msk [vmem:[#allocation2 + $0x6d] sm:$0x1] %vm1316_vm2, %v1729_v59  ;;  %v1697_v61 = vpop.permute.xlu0 %1696 }
 0x73e   : > { %1714 = vst.msk [vmem:[#allocation2 + $0x6c] sm:$0x1] %vm1316_vm2, %v1697_v61 }
 0x73f   : > { %1357 = vst.msk [vmem:[#allocation2 + $0x1] sm:$0x1] %vm1316_vm2, %v1334_v60 }
 0x742   : > { %1407 = vrot.lane.b32.xlu2 %v1330_v58, %s2665_s19  ;;  %1471 = vrot.lane.b32.xlu1 %v1330_v58, %s2661_s27 }
 0x743   : > { %1439 = vrot.lane.b32.xlu0 %v1330_v58, %s2664_s29 }
 0x744   : > { %v1667_v2 = vpop.permute.xlu1 %1666  ;;  %v1430_v63 = vpop.permute.xlu2 %1429 }
 0x745   : > { %1683 = vst.msk [vmem:[#allocation2 + $0x7b] sm:$0x1] %vm1316_vm2, %v1667_v2  ;;  %v1793_v0 = vpop.permute.xlu0 %1792 }
 0x746   : > { %1810 = vst.msk [vmem:[#allocation2 + $0x6f] sm:$0x1] %vm1316_vm2, %v1793_v0 }
 0x747   : > { %1453 = vst.msk [vmem:[#allocation2 + $0x4] sm:$0x1] %vm1316_vm2, %v1430_v63 }
 0x74a   : > { %1503 = vrot.lane.b32.xlu2 %v1330_v58, %s3996_s1  ;;  %1409 = vrot.lane.b32.xlu1 %v1331_v1, %s2665_s19 }
 0x74b   : > { %1535 = vrot.lane.b32.xlu0 %v1330_v58, %s3997_s24 }
 0x74c   : > { %v1398_v3 = vpop.permute.xlu1 %1397  ;;  %v1526_v4 = vpop.permute.xlu2 %1525 }
 0x74d   : > { %v1635_v5 = vpop.permute.xlu0 %1634  ;;  %1421 = vst.msk [vmem:[#allocation2 + $0x3] sm:$0x1] %vm1316_vm2, %v1398_v3 }
 0x74e   : > { %1651 = vst.msk [vmem:[#allocation2 + $0x7a] sm:$0x1] %vm1316_vm2, %v1635_v5 }
 0x74f   : > { %1549 = vst.msk [vmem:[#allocation2 + $0x7] sm:$0x1] %vm1316_vm2, %v1526_v4 }
 0x752   : > { %1345 = vrot.lane.b32.xlu2 %v1331_v1, %s2667_s4  ;;  %1505 = vrot.lane.b32.xlu1 %v1331_v1, %s3996_s1 }
 0x753   : > { %1377 = vrot.lane.b32.xlu0 %v1331_v1, %s2666_s21 }
 0x754   : > { %v1494_v56 = vpop.permute.xlu1 %1493  ;;  %v1368_v6 = vpop.permute.xlu2 %1367 }
 0x755   : > { %1517 = vst.msk [vmem:[#allocation2 + $0x6] sm:$0x1] %vm1316_vm2, %v1494_v56  ;;  %v1366_v7 = vpop.permute.xlu0 %1365 }
 0x756   : > { %1389 = vst.msk [vmem:[#allocation2 + $0x2] sm:$0x1] %vm1316_vm2, %v1366_v7 }
 0x757   : > { %1390 = vst.msk [vmem:[#allocation2 + $0x12] sm:$0x1] %vm1316_vm2, %v1368_v6 }
 0x75a   : > { %1441 = vrot.lane.b32.xlu2 %v1331_v1, %s2664_s29  ;;  %1347 = vrot.lane.b32.xlu1 %v1332_v8, %s2667_s4  ;;  %s2299_s4 = scalar_lea.hbm %s3965_s18, %s2468_s26  ;;  %s2606_s26 = scalar_lea.hbm %s3965_s18, 1024 }
 0x75b   : > { %1473 = vrot.lane.b32.xlu0 %v1331_v1, %s2661_s27 }
 0x75c   : > { %v1464_v11 = vpop.permute.xlu2 %1463  ;;  %v1336_v12 = vpop.permute.xlu1 %1335 }
 0x75d   : > { %v1462_v13 = vpop.permute.xlu0 %1461  ;;  %1486 = vst.msk [vmem:[#allocation2 + $0x15] sm:$0x1] %vm1316_vm2, %v1464_v11 }
 0x75e   : > { %1485 = vst.msk [vmem:[#allocation2 + $0x5] sm:$0x1] %vm1316_vm2, %v1462_v13 }
 0x75f   : > { %1358 = vst.msk [vmem:[#allocation2 + $0x11] sm:$0x1] %vm1316_vm2, %v1336_v12 }
 0x762   : > { %1537 = vrot.lane.b32.xlu2 %v1331_v1, %s3997_s24  ;;  %1443 = vrot.lane.b32.xlu1 %v1332_v8, %s2664_s29  ;;  %v1828_v1 = vld [vmem:[#allocation2 + $0x58] sm:$0xff] }
 0x763   : > { %1411 = vrot.lane.b32.xlu0 %v1332_v8, %s2665_s19 }
 0x764   : > { %v1402_v41 = vpop.permute.xlu2 %1401  ;;  %v1432_v57 = vpop.permute.xlu1 %1431 }
 0x765   : > { %v1400_v14 = vpop.permute.xlu0 %1399  ;;  %1423 = vst.msk [vmem:[#allocation2 + $0x23] sm:$0x1] %vm1316_vm2, %v1402_v41  ;;  %v1812_v15 = vld [vmem:[#allocation2] sm:$0xff] }
 0x766   : > { %1422 = vst.msk [vmem:[#allocation2 + $0x13] sm:$0x1] %vm1316_vm2, %v1400_v14  ;;  %2444 = vmatmul.msk.f32.vlgmr.msra.gmra.mxu1 %vm806_vm8, %v1812_v15 }
 0x767   : > { %1454 = vst.msk [vmem:[#allocation2 + $0x14] sm:$0x1] %vm1316_vm2, %v1432_v57 }
 0x76a   : > { %1379 = vrot.lane.b32.xlu2 %v1332_v8, %s2666_s21  ;;  %1539 = vrot.lane.b32.xlu1 %v1332_v8, %s3997_s24 }
 0x76b   : > { %1507 = vrot.lane.b32.xlu0 %v1332_v8, %s3996_s1 }
 0x76c   : > { %v1498_v16 = vpop.permute.xlu2 %1497  ;;  %v1528_v17 = vpop.permute.xlu1 %1527 }
 0x76d   : > { %v1496_v18 = vpop.permute.xlu0 %1495  ;;  %1519 = vst.msk [vmem:[#allocation2 + $0x26] sm:$0x1] %vm1316_vm2, %v1498_v16 }
 0x76e   : > { %1518 = vst.msk [vmem:[#allocation2 + $0x16] sm:$0x1] %vm1316_vm2, %v1496_v18  ;;  %2445 = vmatmul.msk.f32.gmra.mxu1 %vm806_vm8, %v1813_v19 }
 0x76f   : > { %1550 = vst.msk [vmem:[#allocation2 + $0x17] sm:$0x1] %vm1316_vm2, %v1528_v17 }
 0x772   : > { %1475 = vrot.lane.b32.xlu2 %v1332_v8, %s2661_s27  ;;  %1762 = vrot.lane.b32.xlu1 %v3350_v9, %s3996_s1  ;;  %v1831_v8 = vld [vmem:[#allocation2 + $0x68] sm:$0xff]  ;;  %s2300_s1 = sshll.u32 %s3761_s23, 4  ;;  %s2301_s1 = int_to_ptr.vmem [resolvable:$true] %s2300_s1 }
 0x773   : > { %1730 = vrot.lane.b32.xlu0 %v3350_v9, %s2661_s27 }
 0x774   : > { %v1340_v20 = vpop.permute.xlu2 %1339  ;;  %v1370_v21 = vpop.permute.xlu1 %1369 }
 0x775   : > { %v1338_v22 = vpop.permute.xlu0 %1337  ;;  %1360 = vst.msk [vmem:[#allocation2 + $0x31] sm:$0x1] %vm1316_vm2, %v1340_v20 }
 0x776   : > { %1359 = vst.msk [vmem:[#allocation2 + $0x21] sm:$0x1] %vm1316_vm2, %v1338_v22  ;;  %v1815_v23 = vld [vmem:[#allocation2 + $0x10] sm:$0xff] }
 0x777   : > { %1391 = vst.msk [vmem:[#allocation2 + $0x22] sm:$0x1] %vm1316_vm2, %v1370_v21  ;;  %2446 = vmatmul.msk.f32.gmra.mxu1 %vm806_vm8, %v1815_v23 }
 0x77a   : > { %1794 = vrot.lane.b32.xlu2 %v3350_v9, %s3997_s24  ;;  %s2302_s24 = sshll.u32 %s2299_s4, 4  ;;  %s2303_s24 = int_to_ptr.hbm [resolvable:$true] %s2302_s24 }
 0x77b   : > { %s2600_s25 = sshra.s32 %s2303_s24, 4  ;;  %s2601_s25 = int_to_ptr.hbm [resolvable:$true] %s2600_s25 }
 0x77c   : > { %v1436_v24 = vpop.permute.xlu2 %1435  ;;  %v1466_v25 = vpop.permute.xlu1 %1465  ;;  %s2602_s27 = scalar_lea.hbm %s2601_s25, 512  ;;  %p2607_p0 = scmp.lt.s32.totalorder %s2601_s25, %s3965_s18 }
 0x77d   : > { %v1434_v26 = vpop.permute.xlu0 %1433  ;;  %1456 = vst.msk [vmem:[#allocation2 + $0x34] sm:$0x1] %vm1316_vm2, %v1436_v24  ;;  %p2603_p11 = scmp.ne.s32.totalorder %s2601_s25, %s2602_s27  ;;  %p2608_p1 = scmp.lt.s32.totalorder %s2606_s26, %s2602_s27 }
 0x77e   : > { %1455 = vst.msk [vmem:[#allocation2 + $0x24] sm:$0x1] %vm1316_vm2, %v1434_v26 }
 0x77f   : > { %1487 = vst.msk [vmem:[#allocation2 + $0x25] sm:$0x1] %vm1316_vm2, %v1466_v25  ;;  %2447 = vmatmul.msk.f32.gmra.mxu1 %vm806_vm8, %v1816_v27  ;;  %p2604_p12 = pnand %p2603_p11, %p2802_p5  ;;  %p2609_p2 = por %p2608_p1, %p2607_p0 }
 0x781   : > { %p2605_p13 = pneg %p2604_p12 }
 0x783   : > { %p2610_p3 = pnand %p2609_p2, %p2605_p13 }
 0x784   : > { %v1532_v28 = vpop.permute.xlu2 %1531  ;;  %v1404_v29 = vpop.permute.xlu1 %1403 }
 0x785   : > { %v1530_v30 = vpop.permute.xlu0 %1529  ;;  %1552 = vst.msk [vmem:[#allocation2 + $0x37] sm:$0x1] %vm1316_vm2, %v1532_v28 }
 0x786   : > { %1551 = vst.msk [vmem:[#allocation2 + $0x27] sm:$0x1] %vm1316_vm2, %v1530_v30  ;;  %v1995_v30 = vld [vmem:[%s3964_s17 + $0x168] sm:$0xff] }
 0x787   : > { %1424 = vst.msk [vmem:[#allocation2 + $0x33] sm:$0x1] %vm1316_vm2, %v1404_v29  ;;  %v1975_v29 = vld [vmem:[%s3964_s17 + $0xc8] sm:$0xff] }
 0x78c   : > { %v1374_v9 = vpop.permute.xlu2 %1373  ;;  %v1500_v31 = vpop.permute.xlu1 %1499 }
 0x78d   : > { %v1372_v32 = vpop.permute.xlu0 %1371  ;;  %1393 = vst.msk [vmem:[#allocation2 + $0x42] sm:$0x1] %vm1316_vm2, %v1374_v9  ;;  %v1818_v33 = vld [vmem:[#allocation2 + $0x20] sm:$0xff] }
 0x78e   : > { %1392 = vst.msk [vmem:[#allocation2 + $0x32] sm:$0x1] %vm1316_vm2, %v1372_v32  ;;  %2448 = vmatmul.msk.f32.gmra.mxu1 %vm806_vm8, %v1818_v33  ;;  %v1950_v9 = vld [vmem:[%s3964_s17] sm:$0xff]  ;;  %v1996_v32 = vld [vmem:[%s3964_s17 + $0x170] sm:$0xff]  ;;  %v1951_v33 = vld [vmem:[%s3964_s17 + $0x8] sm:$0xff] }
 0x78f   : > { %1520 = vst.msk [vmem:[#allocation2 + $0x36] sm:$0x1] %vm1316_vm2, %v1500_v31  ;;  %v1976_v31 = vld [vmem:[%s3964_s17 + $0xd0] sm:$0xff] }
 0x794   : > { %v1470_v34 = vpop.permute.xlu2 %1469  ;;  %v1342_v35 = vpop.permute.xlu1 %1341 }
 0x795   : > { %v1468_v36 = vpop.permute.xlu0 %1467  ;;  %1489 = vst.msk [vmem:[#allocation2 + $0x45] sm:$0x1] %vm1316_vm2, %v1470_v34  ;;  %v1977_v34 = vld [vmem:[%s3964_s17 + $0xd8] sm:$0xff] }
 0x796   : > { %1488 = vst.msk [vmem:[#allocation2 + $0x35] sm:$0x1] %vm1316_vm2, %v1468_v36  ;;  %2449 = vmatmul.msk.f32.gmra.mxu1 %vm806_vm8, %v1819_v37  ;;  %v1952_v36 = vld [vmem:[%s3964_s17 + $0x10] sm:$0xff]  ;;  %v1978_v37 = vld [vmem:[%s3964_s17 + $0xe0] sm:$0xff] }
 0x797   : > { %1361 = vst.msk [vmem:[#allocation2 + $0x41] sm:$0x1] %vm1316_vm2, %v1342_v35  ;;  %v1997_v35 = vld [vmem:[%s3964_s17 + $0x178] sm:$0xff] }
 0x79c   : > { %v1408_v38 = vpop.permute.xlu2 %1407  ;;  %v1438_v39 = vpop.permute.xlu1 %1437 }
 0x79d   : > { %v1406_v40 = vpop.permute.xlu0 %1405  ;;  %1426 = vst.msk [vmem:[#allocation2 + $0x53] sm:$0x1] %vm1316_vm2, %v1408_v38  ;;  %v1821_v10 = vld [vmem:[#allocation2 + $0x30] sm:$0xff]  ;;  %v1998_v38 = vld [vmem:[%s3964_s17 + $0x180] sm:$0xff] }
 0x79e   : > { %1425 = vst.msk [vmem:[#allocation2 + $0x43] sm:$0x1] %vm1316_vm2, %v1406_v40  ;;  %2450 = vmatmul.msk.f32.gmra.mxu1 %vm806_vm8, %v1821_v10  ;;  %v1979_v40 = vld [vmem:[%s3964_s17 + $0xe8] sm:$0xff] }
 0x79f   : > { %1457 = vst.msk [vmem:[#allocation2 + $0x44] sm:$0x1] %vm1316_vm2, %v1438_v39  ;;  %v1953_v39 = vld [vmem:[%s3964_s17 + $0x18] sm:$0xff]  ;;  %v1999_v10 = vld [vmem:[%s3964_s17 + $0x188] sm:$0xff] }
 0x7a4   : > { %v1504_v42 = vpop.permute.xlu2 %1503  ;;  %v1534_v43 = vpop.permute.xlu1 %1533 }
 0x7a5   : > { %v1502_v44 = vpop.permute.xlu0 %1501  ;;  %1522 = vst.msk [vmem:[#allocation2 + $0x56] sm:$0x1] %vm1316_vm2, %v1504_v42  ;;  %v1954_v42 = vld [vmem:[%s3964_s17 + $0x20] sm:$0xff] }
 0x7a6   : > { %1521 = vst.msk [vmem:[#allocation2 + $0x46] sm:$0x1] %vm1316_vm2, %v1502_v44  ;;  %2451 = vmatmul.msk.f32.gmra.mxu1 %vm806_vm8, %v1822_v45  ;;  %v2000_v44 = vld [vmem:[%s3964_s17 + $0x190] sm:$0xff]  ;;  %v1955_v45 = vld [vmem:[%s3964_s17 + $0x28] sm:$0xff] }
 0x7a7   : > { %1553 = vst.msk [vmem:[#allocation2 + $0x47] sm:$0x1] %vm1316_vm2, %v1534_v43  ;;  %v1980_v43 = vld [vmem:[%s3964_s17 + $0xf0] sm:$0xff] }
 0x7ac   : > { %v1346_v46 = vpop.permute.xlu2 %1345  ;;  %v1376_v47 = vpop.permute.xlu1 %1375 }
 0x7ad   : > { %v1344_v48 = vpop.permute.xlu0 %1343  ;;  %1363 = vst.msk [vmem:[#allocation2 + $0x61] sm:$0x1] %vm1316_vm2, %v1346_v46  ;;  %v1981_v46 = vld [vmem:[%s3964_s17 + $0xf8] sm:$0xff] }
 0x7ae   : > { %1362 = vst.msk [vmem:[#allocation2 + $0x51] sm:$0x1] %vm1316_vm2, %v1344_v48  ;;  %v1824_v49 = vld [vmem:[#allocation2 + $0x40] sm:$0xff]  ;;  %v1956_v48 = vld [vmem:[%s3964_s17 + $0x30] sm:$0xff] }
 0x7af   : > { %1394 = vst.msk [vmem:[#allocation2 + $0x52] sm:$0x1] %vm1316_vm2, %v1376_v47  ;;  %2452 = vmatmul.msk.f32.gmra.mxu1 %vm806_vm8, %v1824_v49  ;;  %v2001_v47 = vld [vmem:[%s3964_s17 + $0x198] sm:$0xff]  ;;  %v1982_v49 = vld [vmem:[%s3964_s17 + $0x100] sm:$0xff] }
 0x7b4   : > { %v1442_v50 = vpop.permute.xlu2 %1441  ;;  %v1472_v51 = vpop.permute.xlu1 %1471 }
 0x7b5   : > { %v1440_v52 = vpop.permute.xlu0 %1439  ;;  %1459 = vst.msk [vmem:[#allocation2 + $0x64] sm:$0x1] %vm1316_vm2, %v1442_v50  ;;  %v2002_v50 = vld [vmem:[%s3964_s17 + $0x1a0] sm:$0xff] }
 0x7b6   : > { %1458 = vst.msk [vmem:[#allocation2 + $0x54] sm:$0x1] %vm1316_vm2, %v1440_v52  ;;  %v1983_v52 = vld [vmem:[%s3964_s17 + $0x108] sm:$0xff] }
 0x7b7   : > { %1490 = vst.msk [vmem:[#allocation2 + $0x55] sm:$0x1] %vm1316_vm2, %v1472_v51  ;;  %2453 = vmatmul.msk.f32.gmra.mxu1 %vm806_vm8, %v1825_v53  ;;  %v1957_v51 = vld [vmem:[%s3964_s17 + $0x38] sm:$0xff]  ;;  %v2003_v53 = vld [vmem:[%s3964_s17 + $0x1a8] sm:$0xff] }
 0x7bc   : > { %v1538_v54 = vpop.permute.xlu2 %1537  ;;  %v1410_v58 = vpop.permute.xlu1 %1409 }
 0x7bd   : > { %v1536_v59 = vpop.permute.xlu0 %1535  ;;  %1555 = vst.msk [vmem:[#allocation2 + $0x67] sm:$0x1] %vm1316_vm2, %v1538_v54  ;;  %v1958_v54 = vld [vmem:[%s3964_s17 + $0x40] sm:$0xff] }
 0x7be   : > { %1554 = vst.msk [vmem:[#allocation2 + $0x57] sm:$0x1] %vm1316_vm2, %v1536_v59  ;;  %v2004_v59 = vld [vmem:[%s3964_s17 + $0x1b0] sm:$0xff] }
 0x7bf   : > { %1427 = vst.msk [vmem:[#allocation2 + $0x63] sm:$0x1] %vm1316_vm2, %v1410_v58  ;;  %v1984_v58 = vld [vmem:[%s3964_s17 + $0x110] sm:$0xff] }
 0x7c4   : > { %v1380_v60 = vpop.permute.xlu2 %1379  ;;  %v1506_v61 = vpop.permute.xlu1 %1505 }
 0x7c5   : > { %v1378_v62 = vpop.permute.xlu0 %1377  ;;  %1396 = vst.msk [vmem:[#allocation2 + $0x72] sm:$0x1] %vm1316_vm2, %v1380_v60  ;;  %v1827_v55 = vld [vmem:[#allocation2 + $0x50] sm:$0xff]  ;;  %v1959_v60 = vld [vmem:[%s3964_s17 + $0x48] sm:$0xff] }
 0x7c6   : > { %1395 = vst.msk [vmem:[#allocation2 + $0x62] sm:$0x1] %vm1316_vm2, %v1378_v62  ;;  %2454 = vmatmul.msk.f32.gmra.mxu1 %vm806_vm8, %v1827_v55  ;;  %v2005_v62 = vld [vmem:[%s3964_s17 + $0x1b8] sm:$0xff]  ;;  %v1960_v55 = vld [vmem:[%s3964_s17 + $0x50] sm:$0xff] }
 0x7c7   : > { %1523 = vst.msk [vmem:[#allocation2 + $0x66] sm:$0x1] %vm1316_vm2, %v1506_v61  ;;  %v1985_v61 = vld [vmem:[%s3964_s17 + $0x118] sm:$0xff] }
 0x7cc   : > { %v1476_v2 = vpop.permute.xlu2 %1475  ;;  %v1348_v63 = vpop.permute.xlu1 %1347 }
 0x7cd   : > { %v1474_v0 = vpop.permute.xlu0 %1473  ;;  %1492 = vst.msk [vmem:[#allocation2 + $0x75] sm:$0x1] %vm1316_vm2, %v1476_v2  ;;  %v1969_v2 = vld [vmem:[%s3964_s17 + $0x98] sm:$0xff] }
 0x7ce   : > { %1491 = vst.msk [vmem:[#allocation2 + $0x65] sm:$0x1] %vm1316_vm2, %v1474_v0  ;;  %2455 = vmatmul.msk.f32.gmra.mxu1 %vm806_vm8, %v1828_v1  ;;  %v2006_v0 = vld [vmem:[%s3964_s17 + $0x1c0] sm:$0xff]  ;;  %v1961_v1 = vld [vmem:[%s3964_s17 + $0x58] sm:$0xff] }
 0x7cf   : > { %1364 = vst.msk [vmem:[#allocation2 + $0x71] sm:$0x1] %vm1316_vm2, %v1348_v63  ;;  %v1986_v63 = vld [vmem:[%s3964_s17 + $0x120] sm:$0xff] }
 0x7d4   : > { %v1795_v3 = vpop.permute.xlu2 %1794  ;;  %v1444_v4 = vpop.permute.xlu1 %1443 }
 0x7d5   : > { %v1412_v5 = vpop.permute.xlu0 %1411  ;;  %1811 = vst.msk [vmem:[#allocation2 + $0x7f] sm:$0x1] %vm1316_vm2, %v1795_v3  ;;  %v1830_v56 = vld [vmem:[#allocation2 + $0x60] sm:$0xff] }
 0x7d6   : > { %1428 = vst.msk [vmem:[#allocation2 + $0x73] sm:$0x1] %vm1316_vm2, %v1412_v5  ;;  %2456 = vmatmul.msk.f32.gmra.mxu1 %vm806_vm8, %v1830_v56  ;;  %v1970_v3 = vld [vmem:[%s3964_s17 + $0xa0] sm:$0xff]  ;;  %v2007_v5 = vld [vmem:[%s3964_s17 + $0x1c8] sm:$0xff] }
 0x7d7   : > { %1460 = vst.msk [vmem:[#allocation2 + $0x74] sm:$0x1] %vm1316_vm2, %v1444_v4  ;;  %v1987_v4 = vld [vmem:[%s3964_s17 + $0x128] sm:$0xff]  ;;  %v1962_v56 = vld [vmem:[%s3964_s17 + $0x60] sm:$0xff] }
 0x7dc   : > { %v1540_v6 = vpop.permute.xlu1 %1539 }
 0x7dd   : > { %v1508_v7 = vpop.permute.xlu0 %1507  ;;  %1556 = vst.msk [vmem:[#allocation2 + $0x77] sm:$0x1] %vm1316_vm2, %v1540_v6  ;;  %v1971_v6 = vld [vmem:[%s3964_s17 + $0xa8] sm:$0xff] }
 0x7de   : > { %1524 = vst.msk [vmem:[#allocation2 + $0x76] sm:$0x1] %vm1316_vm2, %v1508_v7  ;;  %2457 = vmatmul.msk.f32.gmra.mxu1 %vm806_vm8, %v1831_v8  ;;  %v1988_v7 = vld [vmem:[%s3964_s17 + $0x130] sm:$0xff] }
 0x7df   : > { %v2008_v8 = vld [vmem:[%s3964_s17 + $0x1d0] sm:$0xff] }
 0x7e3   : > { %v3559_v12 = vpop.f32.mrf.mxu1 }
 0x7e4   : > { %v1763_v11 = vpop.permute.xlu1 %1762 }
 0x7e5   : > { %v1731_v13 = vpop.permute.xlu0 %1730  ;;  %1779 = vst.msk [vmem:[#allocation2 + $0x7e] sm:$0x1] %vm1316_vm2, %v1763_v11  ;;  %v1833_v41 = vld [vmem:[#allocation2 + $0x70] sm:$0xff]  ;;  %v1963_v11 = vld [vmem:[%s3964_s17 + $0x68] sm:$0xff] }
 0x7e6   : > { %1747 = vst.msk [vmem:[#allocation2 + $0x7d] sm:$0x1] %vm1316_vm2, %v1731_v13  ;;  %2458 = vmatmul.msk.f32.gmra.mxu1 %vm806_vm8, %v1833_v41  ;;  %v1989_v13 = vld [vmem:[%s3964_s17 + $0x138] sm:$0xff] }
 0x7e7   : > { %v2009_v41 = vld [vmem:[%s3964_s17 + $0x1d8] sm:$0xff] }
 0x7eb   : > { %v3565_v14 = vpop.f32.mrf.mxu1 }
 0x7ed   : > { %v1834_v57 = vld [vmem:[#allocation2 + $0x78] sm:$0xff] }
 0x7ee   : > { %2459 = vmatmul.msk.f32.gmra.mxu1 %vm806_vm8, %v1834_v57  ;;  %v1964_v57 = vld [vmem:[%s3964_s17 + $0x70] sm:$0xff] }
 0x7f4   : > { %v3567_v15 = vpop.f32.mrf.mxu1 }
 0x7fc   : > { %v3569_v16 = vpop.f32.mrf.mxu1 }
 0x80b   : > { %v1914_v17 = vpop.f32.mrf.mxu1 }
 0x813   : > { %v1917_v18 = vpop.f32.mrf.mxu1 }
 0x81b   : > { %v1920_v19 = vpop.f32.mrf.mxu1 }
 0x823   : > { %v1923_v20 = vpop.f32.mrf.mxu1 }
 0x82c   : > { %v1926_v21 = vpop.f32.mrf.mxu1 }
 0x834   : > { %v1929_v22 = vpop.f32.mrf.mxu1 }
 0x843   : > { %v1932_v23 = vpop.f32.mrf.mxu1 }
 0x84b   : > { %v1935_v24 = vpop.f32.mrf.mxu1 }
 0x853   : > { %v1938_v25 = vpop.f32.mrf.mxu1 }
 0x85b   : > { %v1941_v26 = vpop.f32.mrf.mxu1 }
 0x863   : > { %v1944_v27 = vpop.f32.mrf.mxu1 }
 0x86b   : > { %v1947_v28 = vpop.f32.mrf.mxu1 }
 0x86c   : > { %2014 = vmatpush.msrb.mxu0 %v1947_v28  ;;  %2472 = vmatpush.msrb.mxu1 %v1947_v28 }
 0x86d   : > { %2473 = vmatpush.msrb.mxu2 %v1947_v28  ;;  %2474 = vmatpush.msra.mxu3 %v1947_v28  ;;  %v1967_v28 = vld [vmem:[%s3964_s17 + $0x88] sm:$0xff] }
 0x86e   : > { %2015 = vmatpush.msrb.mxu0 %v1944_v27  ;;  %2475 = vmatpush.msrb.mxu1 %v1944_v27 }
 0x86f   : > { %2476 = vmatpush.msrb.mxu2 %v1944_v27  ;;  %2477 = vmatpush.msra.mxu3 %v1944_v27 }
 0x870   : > { %2016 = vmatpush.msrb.mxu0 %v1941_v26  ;;  %2478 = vmatpush.msrb.mxu1 %v1941_v26 }
 0x871   : > { %2479 = vmatpush.msrb.mxu2 %v1941_v26  ;;  %2480 = vmatpush.msra.mxu3 %v1941_v26  ;;  %v2012_v26 = vld [vmem:[%s3964_s17 + $0x1f0] sm:$0xff] }
 0x872   : > { %2017 = vmatpush.msrb.mxu0 %v1938_v25  ;;  %2481 = vmatpush.msrb.mxu1 %v1938_v25 }
 0x873   : > { %2482 = vmatpush.msrb.mxu2 %v1938_v25  ;;  %2483 = vmatpush.msra.mxu3 %v1938_v25  ;;  %v1992_v25 = vld [vmem:[%s3964_s17 + $0x150] sm:$0xff] }
 0x874   : > { %2018 = vmatpush.msrb.mxu0 %v1935_v24  ;;  %2484 = vmatpush.msrb.mxu1 %v1935_v24 }
 0x875   : > { %2485 = vmatpush.msrb.mxu2 %v1935_v24  ;;  %2486 = vmatpush.msra.mxu3 %v1935_v24 }
 0x876   : > { %2019 = vmatpush.msrb.mxu0 %v1932_v23  ;;  %2487 = vmatpush.msrb.mxu1 %v1932_v23 }
 0x877   : > { %2488 = vmatpush.msrb.mxu2 %v1932_v23  ;;  %2489 = vmatpush.msra.mxu3 %v1932_v23 }
 0x878   : > { %2020 = vmatpush.msrb.mxu0 %v1929_v22  ;;  %2490 = vmatpush.msrb.mxu1 %v1929_v22 }
 0x879   : > { %2491 = vmatpush.msrb.mxu2 %v1929_v22  ;;  %2492 = vmatpush.msra.mxu3 %v1929_v22  ;;  %v1966_v22 = vld [vmem:[%s3964_s17 + $0x80] sm:$0xff] }
 0x87a   : > { %2021 = vmatpush.msrb.mxu0 %v1926_v21  ;;  %2493 = vmatpush.msrb.mxu1 %v1926_v21 }
 0x87b   : > { %2494 = vmatpush.msrb.mxu2 %v1926_v21  ;;  %2495 = vmatpush.msra.mxu3 %v1926_v21 }
 0x87c   : > { %2022 = vmatpush.msrb.mxu0 %v1923_v20  ;;  %2496 = vmatpush.msrb.mxu1 %v1923_v20 }
 0x87d   : > { %2497 = vmatpush.msrb.mxu2 %v1923_v20  ;;  %2498 = vmatpush.msra.mxu3 %v1923_v20  ;;  %v2011_v20 = vld [vmem:[%s3964_s17 + $0x1e8] sm:$0xff] }
 0x87e   : > { %2023 = vmatpush.msrb.mxu0 %v1920_v19  ;;  %2499 = vmatpush.msrb.mxu1 %v1920_v19 }
 0x87f   : > { %2500 = vmatpush.msrb.mxu2 %v1920_v19  ;;  %2501 = vmatpush.msra.mxu3 %v1920_v19  ;;  %v1991_v19 = vld [vmem:[%s3964_s17 + $0x148] sm:$0xff] }
 0x880   : > { %2024 = vmatpush.msrb.mxu0 %v1917_v18  ;;  %2502 = vmatpush.msrb.mxu1 %v1917_v18 }
 0x881   : > { %2503 = vmatpush.msrb.mxu2 %v1917_v18  ;;  %2504 = vmatpush.msra.mxu3 %v1917_v18  ;;  %v1974_v18 = vld [vmem:[%s3964_s17 + $0xc0] sm:$0xff] }
 0x882   : > { %2025 = vmatpush.msrb.mxu0 %v1914_v17  ;;  %2505 = vmatpush.msrb.mxu1 %v1914_v17 }
 0x883   : > { %2506 = vmatpush.msrb.mxu2 %v1914_v17  ;;  %2507 = vmatpush.msra.mxu3 %v1914_v17  ;;  %v1965_v17 = vld [vmem:[%s3964_s17 + $0x78] sm:$0xff] }
 0x884   : > { %2026 = vmatpush.msrb.mxu0 %v3569_v16  ;;  %2508 = vmatpush.msrb.mxu1 %v3569_v16 }
 0x885   : > { %2509 = vmatpush.msrb.mxu2 %v3569_v16  ;;  %2510 = vmatpush.msra.mxu3 %v3569_v16  ;;  %v2010_v16 = vld [vmem:[%s3964_s17 + $0x1e0] sm:$0xff] }
 0x886   : > { %2027 = vmatpush.msrb.mxu0 %v3567_v15  ;;  %2511 = vmatpush.msrb.mxu1 %v3567_v15 }
 0x887   : > { %2512 = vmatpush.msrb.mxu2 %v3567_v15  ;;  %2513 = vmatpush.msra.mxu3 %v3567_v15  ;;  %v1990_v15 = vld [vmem:[%s3964_s17 + $0x140] sm:$0xff] }
 0x888   : > { %2028 = vmatpush.msrb.mxu0 %v3565_v14  ;;  %2514 = vmatpush.msrb.mxu1 %v3565_v14 }
 0x889   : > { %2515 = vmatpush.msrb.mxu2 %v3565_v14  ;;  %2516 = vmatpush.msra.mxu3 %v3565_v14  ;;  %v1973_v14 = vld [vmem:[%s3964_s17 + $0xb8] sm:$0xff] }
 0x88a   : > { %2029 = vmatpush.msrb.mxu0 %v3559_v12  ;;  %2517 = vmatpush.msrb.mxu1 %v3559_v12 }
 0x88b   : > { %2518 = vmatpush.msrb.mxu2 %v3559_v12  ;;  %2519 = vmatpush.msra.mxu3 %v3559_v12  ;;  %v1972_v12 = vld [vmem:[%s3964_s17 + $0xb0] sm:$0xff] }
 0x88c   : > { %2105 = vmatmul.f32.vlgmr.msrb.gmra.mxu2 %v1975_v29  ;;  %2165 = vmatmul.f32.vlgmr.msra.gmra.mxu3 %v1995_v30 }
 0x88d   : > { %2030 = vmatmul.f32.vlgmr.msrb.gmra.mxu0 %v1950_v9  ;;  %2087 = vmatmul.f32.vlgmr.msrb.gmra.mxu1 %v1969_v2  ;;  %v1993_v9 = vld [vmem:[%s3964_s17 + $0x158] sm:$0xff] }
 0x894   : > { %2108 = vmatmul.f32.gmra.mxu2 %v1976_v31  ;;  %2168 = vmatmul.f32.gmra.mxu3 %v1996_v32  ;;  %v2013_v31 = vld [vmem:[%s3964_s17 + $0x1f8] sm:$0xff] }
 0x895   : > { %2033 = vmatmul.f32.gmra.mxu0 %v1951_v33  ;;  %2090 = vmatmul.f32.gmra.mxu1 %v1970_v3  ;;  %v1968_v33 = vld [vmem:[%s3964_s17 + $0x90] sm:$0xff] }
 0x89c   : > { %2111 = vmatmul.f32.gmra.mxu2 %v1977_v34  ;;  %2171 = vmatmul.f32.gmra.mxu3 %v1997_v35 }
 0x89d   : > { %2036 = vmatmul.f32.gmra.mxu0 %v1952_v36  ;;  %2093 = vmatmul.f32.gmra.mxu1 %v1971_v6  ;;  %v1994_v36 = vld [vmem:[%s3964_s17 + $0x160] sm:$0xff] }
 0x8a4   : > { %2114 = vmatmul.f32.gmra.mxu2 %v1978_v37  ;;  %2174 = vmatmul.f32.gmra.mxu3 %v1998_v38 }
 0x8a5   : > { %2039 = vmatmul.f32.gmra.mxu0 %v1953_v39  ;;  %2096 = vmatmul.f32.gmra.mxu1 %v1972_v12 }
 0x8ac   : > { %2117 = vmatmul.f32.gmra.mxu2 %v1979_v40  ;;  %2177 = vmatmul.f32.gmra.mxu3 %v1999_v10 }
 0x8ad   : > { %2042 = vmatmul.f32.gmra.mxu0 %v1954_v42  ;;  %2099 = vmatmul.f32.gmra.mxu1 %v1973_v14 }
 0x8b4   : > { %2120 = vmatmul.f32.gmra.mxu2 %v1980_v43  ;;  %2180 = vmatmul.f32.gmra.mxu3 %v2000_v44 }
 0x8b5   : > { %2045 = vmatmul.f32.gmra.mxu0 %v1955_v45  ;;  %2102 = vmatmul.f32.gmra.mxu1 %v1974_v18 }
 0x8bc   : > { %2123 = vmatmul.f32.gmra.mxu2 %v1981_v46  ;;  %2183 = vmatmul.f32.gmra.mxu3 %v2001_v47 }
 0x8bd   : > { %2048 = vmatmul.f32.gmra.mxu0 %v1956_v48 }
 0x8c4   : > { %2126 = vmatmul.f32.gmra.mxu2 %v1982_v49  ;;  %2186 = vmatmul.f32.gmra.mxu3 %v2002_v50 }
 0x8c5   : > { %2051 = vmatmul.f32.gmra.mxu0 %v1957_v51 }
 0x8cc   : > { %2129 = vmatmul.f32.gmra.mxu2 %v1983_v52  ;;  %2189 = vmatmul.f32.gmra.mxu3 %v2003_v53 }
 0x8cd   : > { %2054 = vmatmul.f32.gmra.mxu0 %v1958_v54 }
 0x8d4   : > { %2132 = vmatmul.f32.gmra.mxu2 %v1984_v58  ;;  %2192 = vmatmul.f32.gmra.mxu3 %v2004_v59 }
 0x8d5   : > { %2057 = vmatmul.f32.gmra.mxu0 %v1959_v60 }
 0x8dc   : > { %2135 = vmatmul.f32.gmra.mxu2 %v1985_v61  ;;  %2195 = vmatmul.f32.gmra.mxu3 %v2005_v62 }
 0x8dd   : > { %2060 = vmatmul.f32.gmra.mxu0 %v1960_v55 }
 0x8e4   : > { %2138 = vmatmul.f32.gmra.mxu2 %v1986_v63  ;;  %2198 = vmatmul.f32.gmra.mxu3 %v2006_v0 }
 0x8e5   : > { %2063 = vmatmul.f32.gmra.mxu0 %v1961_v1 }
 0x8ec   : > { %2141 = vmatmul.f32.gmra.mxu2 %v1987_v4  ;;  %2201 = vmatmul.f32.gmra.mxu3 %v2007_v5 }
 0x8ed   : > { %2066 = vmatmul.f32.gmra.mxu0 %v1962_v56 }
 0x8f4   : > { %2144 = vmatmul.f32.gmra.mxu2 %v1988_v7  ;;  %2204 = vmatmul.f32.gmra.mxu3 %v2008_v8 }
 0x8f5   : > { %2069 = vmatmul.f32.gmra.mxu0 %v1963_v11 }
 0x8fc   : > { %2147 = vmatmul.f32.gmra.mxu2 %v1989_v13  ;;  %2207 = vmatmul.f32.gmra.mxu3 %v2009_v41 }
 0x8fd   : > { %2072 = vmatmul.f32.gmra.mxu0 %v1964_v57 }
 0x904   : > { %2150 = vmatmul.f32.gmra.mxu2 %v1990_v15  ;;  %2210 = vmatmul.f32.gmra.mxu3 %v2010_v16 }
 0x905   : > { %2075 = vmatmul.f32.gmra.mxu0 %v1965_v17 }
 0x90a   : > { %v2031_v21 = vpop.f32.mrf.mxu0  ;;  %v2088_v62 = vpop.f32.mrf.mxu1 }
 0x90b   : > { %2223 = vst.msk [vmem:[%s3761_s23] sm:$0xff] %vm973_vm13, %v2031_v21 }
 0x90c   : > { %2153 = vmatmul.f32.gmra.mxu2 %v1991_v19  ;;  %2213 = vmatmul.f32.gmra.mxu3 %v2011_v20  ;;  %2242 = vst.msk [vmem:[%s3761_s23 + $0x98] sm:$0xff] %vm973_vm13, %v2088_v62 }
 0x90d   : > { %2078 = vmatmul.f32.gmra.mxu0 %v1966_v22 }
 0x90f   : > { %v2106_v23 = vpop.f32.mrf.mxu2  ;;  %v2166_v24 = vpop.f32.mrf.mxu3 }
 0x910   : > { %2248 = vst.msk [vmem:[%s3761_s23 + $0xc8] sm:$0xff] %vm973_vm13, %v2106_v23 }
 0x911   : > { %2268 = vst.msk [vmem:[%s3761_s23 + $0x168] sm:$0xff] %vm973_vm13, %v2166_v24 }
 0x912   : > { %v2034_v27 = vpop.f32.mrf.mxu0  ;;  %v2091_v0 = vpop.f32.mrf.mxu1 }
 0x913   : > { %2224 = vst.msk [vmem:[%s3761_s23 + $0x8] sm:$0xff] %vm973_vm13, %v2034_v27 }
 0x914   : > { %2156 = vmatmul.f32.gmra.mxu2 %v1992_v25  ;;  %2216 = vmatmul.f32.gmra.mxu3 %v2012_v26  ;;  %2243 = vst.msk [vmem:[%s3761_s23 + $0xa0] sm:$0xff] %vm973_vm13, %v2091_v0 }
 0x915   : > { %2081 = vmatmul.f32.gmra.mxu0 %v1967_v28 }
 0x917   : > { %v2109_v29 = vpop.f32.mrf.mxu2  ;;  %v2169_v30 = vpop.f32.mrf.mxu3 }
 0x918   : > { %2249 = vst.msk [vmem:[%s3761_s23 + $0xd0] sm:$0xff] %vm973_vm13, %v2109_v29 }
 0x919   : > { %2269 = vst.msk [vmem:[%s3761_s23 + $0x170] sm:$0xff] %vm973_vm13, %v2169_v30 }
 0x91a   : > { %v2037_v32 = vpop.f32.mrf.mxu0  ;;  %v2094_v5 = vpop.f32.mrf.mxu1 }
 0x91b   : > { %2225 = vst.msk [vmem:[%s3761_s23 + $0x10] sm:$0xff] %vm973_vm13, %v2037_v32 }
 0x91c   : > { %2159 = vmatmul.f32.gmra.mxu2 %v1993_v9  ;;  %2219 = vmatmul.f32.gmra.mxu3 %v2013_v31  ;;  %2244 = vst.msk [vmem:[%s3761_s23 + $0xa8] sm:$0xff] %vm973_vm13, %v2094_v5 }
 0x91d   : > { %2084 = vmatmul.f32.gmra.mxu0 %v1968_v33 }
 0x91f   : > { %v2112_v34 = vpop.f32.mrf.mxu2  ;;  %v2172_v35 = vpop.f32.mrf.mxu3 }
 0x920   : > { %2250 = vst.msk [vmem:[%s3761_s23 + $0xd8] sm:$0xff] %vm973_vm13, %v2112_v34 }
 0x921   : > { %2270 = vst.msk [vmem:[%s3761_s23 + $0x178] sm:$0xff] %vm973_vm13, %v2172_v35 }
 0x922   : > { %v2040_v37 = vpop.f32.mrf.mxu0  ;;  %v2097_v8 = vpop.f32.mrf.mxu1 }
 0x923   : > { %2226 = vst.msk [vmem:[%s3761_s23 + $0x18] sm:$0xff] %vm973_vm13, %v2040_v37 }
 0x924   : > { %2162 = vmatmul.f32.gmra.mxu2 %v1994_v36  ;;  %2245 = vst.msk [vmem:[%s3761_s23 + $0xb0] sm:$0xff] %vm973_vm13, %v2097_v8 }
 0x927   : > { %v2115_v38 = vpop.f32.mrf.mxu2  ;;  %v2175_v39 = vpop.f32.mrf.mxu3 }
 0x928   : > { %2251 = vst.msk [vmem:[%s3761_s23 + $0xe0] sm:$0xff] %vm973_vm13, %v2115_v38 }
 0x929   : > { %2271 = vst.msk [vmem:[%s3761_s23 + $0x180] sm:$0xff] %vm973_vm13, %v2175_v39 }
 0x92a   : > { %v2043_v40 = vpop.f32.mrf.mxu0  ;;  %v2100_v41 = vpop.f32.mrf.mxu1 }
 0x92b   : > { %2227 = vst.msk [vmem:[%s3761_s23 + $0x20] sm:$0xff] %vm973_vm13, %v2043_v40 }
 0x92c   : > { %2246 = vst.msk [vmem:[%s3761_s23 + $0xb8] sm:$0xff] %vm973_vm13, %v2100_v41 }
 0x92f   : > { %v2118_v10 = vpop.f32.mrf.mxu2  ;;  %v2178_v42 = vpop.f32.mrf.mxu3 }
 0x930   : > { %2252 = vst.msk [vmem:[%s3761_s23 + $0xe8] sm:$0xff] %vm973_vm13, %v2118_v10 }
 0x931   : > { %2272 = vst.msk [vmem:[%s3761_s23 + $0x188] sm:$0xff] %vm973_vm13, %v2178_v42 }
 0x932   : > { %v2046_v43 = vpop.f32.mrf.mxu0  ;;  %v2103_v16 = vpop.f32.mrf.mxu1 }
 0x933   : > { %2228 = vst.msk [vmem:[%s3761_s23 + $0x28] sm:$0xff] %vm973_vm13, %v2046_v43 }
 0x934   : > { %2247 = vst.msk [vmem:[%s3761_s23 + $0xc0] sm:$0xff] %vm973_vm13, %v2103_v16 }
 0x937   : > { %v2121_v44 = vpop.f32.mrf.mxu2  ;;  %v2181_v45 = vpop.f32.mrf.mxu3 }
 0x938   : > { %2253 = vst.msk [vmem:[%s3761_s23 + $0xf0] sm:$0xff] %vm973_vm13, %v2121_v44 }
 0x939   : > { %2273 = vst.msk [vmem:[%s3761_s23 + $0x190] sm:$0xff] %vm973_vm13, %v2181_v45 }
 0x93a   : > { %v2049_v46 = vpop.f32.mrf.mxu0 }
 0x93b   : > { %2229 = vst.msk [vmem:[%s3761_s23 + $0x30] sm:$0xff] %vm973_vm13, %v2049_v46 }
 0x93f   : > { %v2124_v47 = vpop.f32.mrf.mxu2  ;;  %v2184_v48 = vpop.f32.mrf.mxu3 }
 0x940   : > { %2254 = vst.msk [vmem:[%s3761_s23 + $0xf8] sm:$0xff] %vm973_vm13, %v2124_v47 }
 0x941   : > { %2274 = vst.msk [vmem:[%s3761_s23 + $0x198] sm:$0xff] %vm973_vm13, %v2184_v48 }
 0x942   : > { %v2052_v49 = vpop.f32.mrf.mxu0 }
 0x943   : > { %2230 = vst.msk [vmem:[%s3761_s23 + $0x38] sm:$0xff] %vm973_vm13, %v2052_v49 }
 0x947   : > { %v2127_v50 = vpop.f32.mrf.mxu2  ;;  %v2187_v51 = vpop.f32.mrf.mxu3 }
 0x948   : > { %2255 = vst.msk [vmem:[%s3761_s23 + $0x100] sm:$0xff] %vm973_vm13, %v2127_v50 }
 0x949   : > { %2275 = vst.msk [vmem:[%s3761_s23 + $0x1a0] sm:$0xff] %vm973_vm13, %v2187_v51 }
 0x94a   : > { %v2055_v52 = vpop.f32.mrf.mxu0 }
 0x94b   : > { %2231 = vst.msk [vmem:[%s3761_s23 + $0x40] sm:$0xff] %vm973_vm13, %v2055_v52 }
 0x94f   : > { %v2130_v53 = vpop.f32.mrf.mxu2  ;;  %v2190_v54 = vpop.f32.mrf.mxu3 }
 0x950   : > { %2256 = vst.msk [vmem:[%s3761_s23 + $0x108] sm:$0xff] %vm973_vm13, %v2130_v53 }
 0x951   : > { %2276 = vst.msk [vmem:[%s3761_s23 + $0x1a8] sm:$0xff] %vm973_vm13, %v2190_v54 }
 0x952   : > { %v2058_v58 = vpop.f32.mrf.mxu0 }
 0x953   : > { %2232 = vst.msk [vmem:[%s3761_s23 + $0x48] sm:$0xff] %vm973_vm13, %v2058_v58 }
 0x957   : > { %v2133_v59 = vpop.f32.mrf.mxu2  ;;  %v2193_v60 = vpop.f32.mrf.mxu3 }
 0x958   : > { %2257 = vst.msk [vmem:[%s3761_s23 + $0x110] sm:$0xff] %vm973_vm13, %v2133_v59 }
 0x959   : > { %2277 = vst.msk [vmem:[%s3761_s23 + $0x1b0] sm:$0xff] %vm973_vm13, %v2193_v60 }
 0x95a   : > { %v2061_v61 = vpop.f32.mrf.mxu0 }
 0x95b   : > { %2233 = vst.msk [vmem:[%s3761_s23 + $0x50] sm:$0xff] %vm973_vm13, %v2061_v61 }
 0x95f   : > { %v2136_v55 = vpop.f32.mrf.mxu2  ;;  %v2196_v2 = vpop.f32.mrf.mxu3 }
 0x960   : > { %2258 = vst.msk [vmem:[%s3761_s23 + $0x118] sm:$0xff] %vm973_vm13, %v2136_v55 }
 0x961   : > { %2278 = vst.msk [vmem:[%s3761_s23 + $0x1b8] sm:$0xff] %vm973_vm13, %v2196_v2 }
 0x962   : > { %v2064_v63 = vpop.f32.mrf.mxu0 }
 0x963   : > { %2234 = vst.msk [vmem:[%s3761_s23 + $0x58] sm:$0xff] %vm973_vm13, %v2064_v63 }
 0x967   : > { %v2139_v1 = vpop.f32.mrf.mxu2  ;;  %v2199_v3 = vpop.f32.mrf.mxu3 }
 0x968   : > { %2259 = vst.msk [vmem:[%s3761_s23 + $0x120] sm:$0xff] %vm973_vm13, %v2139_v1 }
 0x969   : > { %2279 = vst.msk [vmem:[%s3761_s23 + $0x1c0] sm:$0xff] %vm973_vm13, %v2199_v3 }
 0x96a   : > { %v2067_v4 = vpop.f32.mrf.mxu0 }
 0x96b   : > { %2235 = vst.msk [vmem:[%s3761_s23 + $0x60] sm:$0xff] %vm973_vm13, %v2067_v4 }
 0x96f   : > { %v2142_v56 = vpop.f32.mrf.mxu2  ;;  %v2202_v6 = vpop.f32.mrf.mxu3 }
 0x970   : > { %2260 = vst.msk [vmem:[%s3761_s23 + $0x128] sm:$0xff] %vm973_vm13, %v2142_v56 }
 0x971   : > { %2280 = vst.msk [vmem:[%s3761_s23 + $0x1c8] sm:$0xff] %vm973_vm13, %v2202_v6 }
 0x972   : > { %v2070_v7 = vpop.f32.mrf.mxu0 }
 0x973   : > { %2236 = vst.msk [vmem:[%s3761_s23 + $0x68] sm:$0xff] %vm973_vm13, %v2070_v7 }
 0x977   : > { %v2145_v11 = vpop.f32.mrf.mxu2  ;;  %v2205_v12 = vpop.f32.mrf.mxu3 }
 0x978   : > { %2261 = vst.msk [vmem:[%s3761_s23 + $0x130] sm:$0xff] %vm973_vm13, %v2145_v11 }
 0x979   : > { %2281 = vst.msk [vmem:[%s3761_s23 + $0x1d0] sm:$0xff] %vm973_vm13, %v2205_v12 }
 0x97a   : > { %v2073_v13 = vpop.f32.mrf.mxu0 }
 0x97b   : > { %2237 = vst.msk [vmem:[%s3761_s23 + $0x70] sm:$0xff] %vm973_vm13, %v2073_v13 }
 0x97f   : > { %v2148_v57 = vpop.f32.mrf.mxu2  ;;  %v2208_v14 = vpop.f32.mrf.mxu3 }
 0x980   : > { %2262 = vst.msk [vmem:[%s3761_s23 + $0x138] sm:$0xff] %vm973_vm13, %v2148_v57 }
 0x981   : > { %2282 = vst.msk [vmem:[%s3761_s23 + $0x1d8] sm:$0xff] %vm973_vm13, %v2208_v14 }
 0x982   : > { %v2076_v15 = vpop.f32.mrf.mxu0 }
 0x983   : > { %2238 = vst.msk [vmem:[%s3761_s23 + $0x78] sm:$0xff] %vm973_vm13, %v2076_v15 }
 0x987   : > { %v2151_v17 = vpop.f32.mrf.mxu2  ;;  %v2211_v18 = vpop.f32.mrf.mxu3 }
 0x988   : > { %2263 = vst.msk [vmem:[%s3761_s23 + $0x140] sm:$0xff] %vm973_vm13, %v2151_v17 }
 0x989   : > { %2283 = vst.msk [vmem:[%s3761_s23 + $0x1e0] sm:$0xff] %vm973_vm13, %v2211_v18 }
 0x98a   : > { %v2079_v19 = vpop.f32.mrf.mxu0 }
 0x98b   : > { %2239 = vst.msk [vmem:[%s3761_s23 + $0x80] sm:$0xff] %vm973_vm13, %v2079_v19 }
 0x98f   : > { %v2154_v20 = vpop.f32.mrf.mxu2  ;;  %v2214_v21 = vpop.f32.mrf.mxu3 }
 0x990   : > { %2264 = vst.msk [vmem:[%s3761_s23 + $0x148] sm:$0xff] %vm973_vm13, %v2154_v20 }
 0x991   : > { %2284 = vst.msk [vmem:[%s3761_s23 + $0x1e8] sm:$0xff] %vm973_vm13, %v2214_v21 }
 0x992   : > { %v2082_v22 = vpop.f32.mrf.mxu0 }
 0x993   : > { %2240 = vst.msk [vmem:[%s3761_s23 + $0x88] sm:$0xff] %vm973_vm13, %v2082_v22 }
 0x997   : > { %v2157_v23 = vpop.f32.mrf.mxu2  ;;  %v2217_v24 = vpop.f32.mrf.mxu3 }
 0x998   : > { %2265 = vst.msk [vmem:[%s3761_s23 + $0x150] sm:$0xff] %vm973_vm13, %v2157_v23 }
 0x999   : > { %2285 = vst.msk [vmem:[%s3761_s23 + $0x1f0] sm:$0xff] %vm973_vm13, %v2217_v24 }
 0x99a   : > { %v2085_v25 = vpop.f32.mrf.mxu0 }
 0x99b   : > { %2241 = vst.msk [vmem:[%s3761_s23 + $0x90] sm:$0xff] %vm973_vm13, %v2085_v25 }
 0x99f   : > { %v2160_v26 = vpop.f32.mrf.mxu2  ;;  %v2220_v27 = vpop.f32.mrf.mxu3 }
 0x9a0   : > { %2266 = vst.msk [vmem:[%s3761_s23 + $0x158] sm:$0xff] %vm973_vm13, %v2160_v26 }
 0x9a1   : > { %2286 = vst.msk [vmem:[%s3761_s23 + $0x1f8] sm:$0xff] %vm973_vm13, %v2220_v27 }
 0x9a7   : > { %v2163_v28 = vpop.f32.mrf.mxu2 }
 0x9a8   : > { %2267 = vst.msk [vmem:[%s3761_s23 + $0x160] sm:$0xff] %vm973_vm13, %v2163_v28 }
 0x9a9   : > { %2613 = shalt.err (!%p2610_p3)
}
 0x9aa   : > { %s2668_s22 = smov 128   ;;  %s3998_s23 = smov 8  }
 0x9ab   : > { %2520 = dma.vmem_to_hbm [thread:$0]  (%p2802_p5), %s2301_s1, 8192, %s2303_s24, %s2288_s0, %s2668_s22, %s2668_s22, %s3998_s23  }
 0x9ac PF: > { %s3999_s4 = sld [smem:[#allocation6_spill]]  ;;  %p2526_p4 = scmp.ge.s32.totalorder %s2648_s30, 2 }
 0x9ae   : > { %p2523_p7 = pnand %p2526_p4, %p2806_p6 }
 0x9b0   : > { %p2524_p8 = pneg %p2523_p7 }
 0x9b2   : > { %s2317_s20 = sand.u32 1, %s3999_s4  }
 0x9b3   : > { %s2318_s29 = scalar_lea.sflag [#allocation4], %s2317_s20 }
 0x9b4   : > { %2631 = dma.done.wait (%p2524_p8), %s2318_s29, 8192  }
 0x9b5   : > { %2633 = vsyncadd (%p2524_p8), %s2318_s29, 4294959104  ;;  %s4001_s30 = sld [smem:[#allocation8_spill]]  ;;  %s4004_s27 = smov %s2640_s28 }
 0x9b6   : > { %s4002_s25 = sld [smem:[#allocation7_spill]] }
 0x9b7   : > { %s4003_s29 = sld [smem:[#allocation9_spill]] }
 0x9bb   : > { %p28_p9 = scmp.ge.s32.totalorder %s4001_s30, 4  }
 0x9bc   : > { %s4005_s28 = smov %s4002_s25 }
 0x9bd   :  { %30 = sbr.rel (!%p28_p9) target bundleno = 9 (0x9), region = 143 }
 0x9c2   :  { %2324 = vsyncpa [#allocation4], 1 }
 0x9c3   :  { %2326 = vsyncpa [#allocation4 + $0x1], 1 }

</bundles_post_ra>
